<compile_context>
chip_gen: v5e
topology: v5e:2x2
jax: 0.10.0
libtpu: 0.0.40
codegen_flags: <defaults>
</compile_context>

<pallas_src>
import jax
import jax.numpy as jnp
from jax.experimental import pallas as pl
from jax.experimental.pallas import tpu as pltpu

LANE = 128
NEG = -1e30          # "no edge" value used inside the in-kernel softmax


def _round_up(x, m):
    return ((x + m - 1) // m) * m


def _pad2d(x, rows, cols, value=0.0):
    r, c = x.shape
    return jnp.pad(x, ((0, rows - r), (0, cols - c)), constant_values=value)


def _vmem_limit_bytes():
    # ~3/4 of physical VMEM, capped at 100 MiB:
    #   v5e/v6e (128 MiB) -> 96 MiB, v7x (64 MiB per TC) -> 48 MiB.
    cap = 64 * 1024 * 1024                       # conservative fallback
    try:
        cap = int(pltpu.get_tpu_info().vmem_capacity_bytes)
    except Exception:
        pass
    return int(min(100 * 1024 * 1024, cap * 3 // 4))


# --------------- fused kernel: projection + edge softmax + GRU ---------------
def attentive_gru2_kernel(logit_ref, mask_ref, x_ref, wp_ref, bp_ref,
                          wih_ref, bih_ref, whh_ref, bhh_ref, out_ref):
    f32 = jnp.float32
    Tv, Fp = out_ref.shape

    # ---- node projection: hv = Linear(Dropout(x)) over all (src) nodes ------
    # Dropout is eval-mode identity.  Recomputed per dst block (a tiny
    # (Vp,Fp)@(Fp,Hp) matmul hidden under the a@hv MXU work) so the dst grid
    # axis can stay "parallel" (v7x dual-TC) without cross-step scratch init.
    hv = jnp.dot(x_ref[...], wp_ref[...], preferred_element_type=f32) + bp_ref[...]

    # ---- dst-block previous hidden state (slice of the resident node feats) -
    row0 = pl.multiple_of(pl.program_id(0) * Tv, Tv)
    h = x_ref[pl.ds(row0, Tv), :]                            # (Tv, Fp)

    # ---- edge_softmax over incoming edges (per dst row), mask folded here ---
    keep = mask_ref[...] > 0                                 # (Tv, Vp) bool
    logits = logit_ref[...].astype(f32)
    ml = jnp.where(keep, logits, NEG)
    row_max = jnp.max(ml, axis=-1, keepdims=True)
    # masked / padded entries -> exactly 0 (also covers nodes with no in-edges)
    e = jnp.where(keep, jnp.exp(ml - row_max), 0.0)
    denom = jnp.maximum(jnp.sum(e, axis=-1, keepdims=True), 1e-30)
    inv = pl.reciprocal(denom, approx=True)                  # EUP vrcp (free slot)
    inv = inv * (2.0 - denom * inv)                          # one Newton step -> ~f32
    a = e * inv                                              # (Tv, Vp)

    # ---- message passing: c[dst] = sum_src a[dst, src] * hv[src] ------------
    c = jnp.dot(a, hv, preferred_element_type=f32)           # (Tv, Hp)

    # ---- ELU (clamped exp branch so the untaken side never overflows) -------
    context = jnp.where(c > 0.0, c, jnp.exp(jnp.minimum(c, 0.0)) - 1.0)

    # ---- GRUCell(input=context, hidden=h); gates r,z,n fused on last axis ---
    gx = jnp.dot(context, wih_ref[...], preferred_element_type=f32) + bih_ref[...]
    gh = jnp.dot(h, whh_ref[...], preferred_element_type=f32) + bhh_ref[...]
    r = jax.nn.sigmoid(gx[:, :Fp] + gh[:, :Fp])
    z = jax.nn.sigmoid(gx[:, Fp:2 * Fp] + gh[:, Fp:2 * Fp])
    n = jnp.tanh(gx[:, 2 * Fp:] + r * gh[:, 2 * Fp:])
    h_new = (1.0 - z) * n + z * h

    out_ref[...] = jnp.maximum(h_new, 0.0)                   # final ReLU, lane-dense store


# ---------------------------------- wrapper ----------------------------------
def attentive_gru2(adj_logits, adj_mask, node_feats,
                   w_proj, b_proj, w_ih, b_ih, w_hh, b_hh,
                   *, dst_block=256, logits_dtype=jnp.float32):
    """dst_block: 256 fills the 256x256 MXU on v6e/v7x; prefer 128 on v5e.
    logits_dtype: jnp.bfloat16 halves the dominant (V,V) HBM stream for large
    graphs at ~1e-2 relative accuracy on the attention weights."""
    V, F = node_feats.shape
    H = w_proj.shape[0]
    f32 = jnp.float32

    Vp = _round_up(V, LANE)          # src axis (lane dim of adjacency)
    Fp = _round_up(F, LANE)
    Hp = _round_up(H, LANE)

    # ---- dst-tile: largest 128-multiple divisor of Vp <= dst_block whose
    #      double-buffered (Tv, Vp) logits+mask streams fit ~half the VMEM
    #      budget.  (For molecule-sized graphs Vp == 128 -> one grid step.)
    vmem_limit = _vmem_limit_bytes()
    stream_bytes_per_row = Vp * (jnp.dtype(logits_dtype).itemsize + 2)  # logits + bf16 mask
    budget = vmem_limit // 2
    Tv = LANE
    t = LANE
    while t <= min(dst_block, Vp):
        if Vp % t == 0 and 2 * t * stream_bytes_per_row <= budget:
            Tv = t
        t += LANE
    n_blk = Vp // Tv

    # ---- operand packing (pads only; the V^2 mask fold happens in-kernel) ----
    lg = _pad2d(adj_logits.astype(logits_dtype), Vp, Vp)             # raw logits
    mk = _pad2d(adj_mask.astype(jnp.bfloat16), Vp, Vp)               # 0/1 mask, bf16
    x = _pad2d(node_feats.astype(f32), Vp, Fp)

    # project_node Linear(F -> H): pre-transposed and zero-padded
    w_proj_t = _pad2d(w_proj.astype(f32).T, Fp, Hp)                  # (Fp, Hp)
    b_proj_p = _pad2d(b_proj.astype(f32).reshape(1, H), 1, Hp)       # (1, Hp)

    # GRUCell weights (torch layout: (3F, H), (3F, F), (3F,), gates r,z,n).
    # Transpose per gate, zero-pad each gate to Fp, fuse on the last axis so the
    # kernel does two wide matmuls instead of six narrow ones.
    def fuse_w(w, in_pad):
        gates = [w[g * F:(g + 1) * F, :].astype(f32).T for g in range(3)]        # (in, F)
        return jnp.concatenate([_pad2d(g, in_pad, Fp) for g in gates], axis=1)   # (in_pad, 3Fp)

    def fuse_b(b):
        gates = [b[g * F:(g + 1) * F].astype(f32).reshape(1, F) for g in range(3)]
        return jnp.concatenate([_pad2d(g, 1, Fp) for g in gates], axis=1)        # (1, 3Fp)

    w_ih_cat = fuse_w(w_ih, Hp)      # (Hp, 3Fp)
    w_hh_cat = fuse_w(w_hh, Fp)      # (Fp, 3Fp)
    b_ih_cat = fuse_b(b_ih)          # (1, 3Fp)
    b_hh_cat = fuse_b(b_hh)          # (1, 3Fp)

    # grid-invariant operands: single-buffered (no pointless double-buffering)
    def invariant(shape):
        return pl.BlockSpec(shape, lambda i: (0, 0), pipeline_mode=pl.Buffered(1))

    cost = pl.CostEstimate(
        flops=int(2 * Vp * Vp * Hp                     # a @ hv
                  + 2 * n_blk * Vp * Fp * Hp           # per-block hv recompute
                  + 2 * Vp * Hp * 3 * Fp               # GRU input matmul
                  + 2 * Vp * Fp * 3 * Fp),             # GRU hidden matmul
        transcendentals=int(Vp * Vp + Vp * Hp + 3 * Vp * Fp),
        bytes_accessed=int(Vp * Vp * (jnp.dtype(logits_dtype).itemsize + 2)
                           + 2 * Vp * Fp * 4 + Vp * Hp * 4
                           + 4 * (Fp * Hp + Hp * 3 * Fp + Fp * 3 * Fp)),
    )

    out_p = pl.pallas_call(
        attentive_gru2_kernel,
        out_shape=jax.ShapeDtypeStruct((Vp, Fp), f32),
        grid=(n_blk,),
        in_specs=[
            pl.BlockSpec((Tv, Vp), lambda i: (i, 0)),   # raw edge logits (dst block)
            pl.BlockSpec((Tv, Vp), lambda i: (i, 0)),   # bf16 0/1 edge mask (dst block)
            invariant((Vp, Fp)),                        # node feats (src + dst hidden)
            invariant((Fp, Hp)),                        # W_proj^T
            invariant((1, Hp)),                         # b_proj
            invariant((Hp, 3 * Fp)),                    # fused W_ih
            invariant((1, 3 * Fp)),                     # fused b_ih
            invariant((Fp, 3 * Fp)),                    # fused W_hh
            invariant((1, 3 * Fp)),                     # fused b_hh
        ],
        out_specs=pl.BlockSpec((Tv, Fp), lambda i: (i, 0)),
        compiler_params=pltpu.CompilerParams(
            dimension_semantics=("parallel",),
            vmem_limit_bytes=vmem_limit,
        ),
        cost_estimate=cost,
    )(lg, mk, x, w_proj_t, b_proj_p, w_ih_cat, b_ih_cat, w_hh_cat, b_hh_cat)

    # Padded dst rows are benign (mask == 0 -> zero context, zero hidden) but
    # are still sliced off before returning.
    return out_p[:V, :F]


# ------------------------------ pure-JAX reference ---------------------------
def reference(adj_logits, adj_mask, node_feats,
              w_proj, b_proj, w_ih, b_ih, w_hh, b_hh):
    F = node_feats.shape[1]
    masked = jnp.where(adj_mask > 0.0, adj_logits, -1e30)
    e = jnp.exp(masked - jnp.max(masked, axis=-1, keepdims=True)) * adj_mask
    a = e / jnp.maximum(jnp.sum(e, axis=-1, keepdims=True), 1e-30)
    hv = node_feats @ w_proj.T + b_proj
    c = a @ hv
    context = jax.nn.elu(c)
    gx = context @ w_ih.T + b_ih
    gh = node_feats @ w_hh.T + b_hh
    r = jax.nn.sigmoid(gx[:, :F] + gh[:, :F])
    z = jax.nn.sigmoid(gx[:, F:2 * F] + gh[:, F:2 * F])
    n = jnp.tanh(gx[:, 2 * F:] + r * gh[:, 2 * F:])
    h_new = (1.0 - z) * n + z * node_feats
    return jnp.maximum(h_new, 0.0)


if __name__ == "__main__":
    # Two molecule-sized graphs packed block-diagonally (DGL-style batching)
    # into a single kernel call: V = 60 + 40 nodes, F = 32, H = 48.
    V1, V2, F, H = 60, 40, 32, 48
    V = V1 + V2

    key = jax.random.PRNGKey(0)
    ks = jax.random.split(key, 10)

    def rand_adj(k, n):   # ~30% density plus self loops; rows = dst, cols = src
        m = (jax.random.uniform(k, (n, n)) < 0.3).astype(jnp.float32)
        return jnp.maximum(m, jnp.eye(n, dtype=jnp.float32))

    adj_mask = jnp.zeros((V, V), jnp.float32)
    adj_mask = adj_mask.at[:V1, :V1].set(rand_adj(ks[0], V1))
    adj_mask = adj_mask.at[V1:, V1:].set(rand_adj(ks[1], V2))
    adj_logits = jax.random.normal(ks[2], (V, V), dtype=jnp.float32)

    node_feats = jax.random.normal(ks[3], (V, F), dtype=jnp.float32)

    # project_node Linear(F -> H), torch layout
    w_proj = jax.random.normal(ks[4], (H, F), dtype=jnp.float32) * 0.1
    b_proj = jax.random.normal(ks[5], (H,), dtype=jnp.float32) * 0.1

    # GRUCell(input_size=H, hidden_size=F), torch layout, gate order r, z, n
    w_ih = jax.random.normal(ks[6], (3 * F, H), dtype=jnp.float32) * 0.1
    b_ih = jax.random.normal(ks[7], (3 * F,), dtype=jnp.float32) * 0.1
    w_hh = jax.random.normal(ks[8], (3 * F, F), dtype=jnp.float32) * 0.1
    b_hh = jax.random.normal(ks[9], (3 * F,), dtype=jnp.float32) * 0.1

    out = attentive_gru2(adj_logits, adj_mask, node_feats,
                         w_proj, b_proj, w_ih, b_ih, w_hh, b_hh)
    out = jax.block_until_ready(out)

    ref = reference(adj_logits, adj_mask, node_feats,
                    w_proj, b_proj, w_ih, b_ih, w_hh, b_hh)
    assert out.shape == (V, F)
    err = float(jnp.max(jnp.abs(out - ref)))
    assert jnp.allclose(out, ref, atol=1e-4, rtol=1e-4), err

    print("KERNEL_OK")
</pallas_src>

<mosaic_0001>
module attributes {stable_mosaic.version = 11 : i64} {
  func.func @attentive_gru2_kernel(%arg0: i32, %arg1: memref<128x128xf32, #tpu.memory_space<vmem>>, %arg2: memref<128x128xbf16, #tpu.memory_space<vmem>>, %arg3: memref<128x128xf32, #tpu.memory_space<vmem>>, %arg4: memref<128x128xf32, #tpu.memory_space<vmem>>, %arg5: memref<1x128xf32, #tpu.memory_space<vmem>>, %arg6: memref<128x384xf32, #tpu.memory_space<vmem>>, %arg7: memref<1x384xf32, #tpu.memory_space<vmem>>, %arg8: memref<128x384xf32, #tpu.memory_space<vmem>>, %arg9: memref<1x384xf32, #tpu.memory_space<vmem>>, %arg10: memref<128x128xf32, #tpu.memory_space<vmem>>) attributes {dimension_semantics = [#tpu.dimension_semantics<parallel>], iteration_bounds = array<i64: 1>, scalar_prefetch = 0 : i64, scratch_operands = 0 : i64, tpu.core_type = #tpu.core_type<tc>, window_params = [{transform_indices = @transform_0, window_bounds = array<i64: 128, 128>}, {transform_indices = @transform_1, window_bounds = array<i64: 128, 128>}, {pipeline_mode = #tpu.pipeline_mode<synchronous>, transform_indices = @transform_2, window_bounds = array<i64: 128, 128>}, {pipeline_mode = #tpu.pipeline_mode<synchronous>, transform_indices = @transform_3, window_bounds = array<i64: 128, 128>}, {pipeline_mode = #tpu.pipeline_mode<synchronous>, transform_indices = @transform_4, window_bounds = array<i64: 1, 128>}, {pipeline_mode = #tpu.pipeline_mode<synchronous>, transform_indices = @transform_5, window_bounds = array<i64: 128, 384>}, {pipeline_mode = #tpu.pipeline_mode<synchronous>, transform_indices = @transform_6, window_bounds = array<i64: 1, 384>}, {pipeline_mode = #tpu.pipeline_mode<synchronous>, transform_indices = @transform_7, window_bounds = array<i64: 128, 384>}, {pipeline_mode = #tpu.pipeline_mode<synchronous>, transform_indices = @transform_8, window_bounds = array<i64: 1, 384>}, {transform_indices = @transform_9, window_bounds = array<i64: 128, 128>}]} {
    %c0 = arith.constant 0 : index
    %c0_0 = arith.constant 0 : index
    %0 = vector.load %arg3[%c0, %c0_0] : memref<128x128xf32, #tpu.memory_space<vmem>>, vector<128x128xf32>
    %c0_1 = arith.constant 0 : index
    %c0_2 = arith.constant 0 : index
    %1 = vector.load %arg4[%c0_1, %c0_2] : memref<128x128xf32, #tpu.memory_space<vmem>>, vector<128x128xf32>
    %cst = arith.constant dense<0.000000e+00> : vector<128x128xf32>
    %2 = tpu.matmul %0, %1, %cst {dimension_numbers = #tpu.dot_dimension_numbers<[1], [0], [0], [1], [0, 0, 1, 1], [], []>} : vector<128x128xf32>, vector<128x128xf32>, vector<128x128xf32> -> vector<128x128xf32>
    %c0_3 = arith.constant 0 : index
    %c0_4 = arith.constant 0 : index
    %3 = vector.load %arg5[%c0_3, %c0_4] : memref<1x128xf32, #tpu.memory_space<vmem>>, vector<1x128xf32>
    %4 = vector.broadcast %3 : vector<1x128xf32> to vector<128x128xf32>
    %5 = arith.addf %2, %4 : vector<128x128xf32>
    %c128_i32 = arith.constant 128 : i32
    %6 = arith.muli %arg0, %c128_i32 : i32
    %7 = tpu.assume_multiple %6, 128 : i32
    %8 = arith.index_cast %7 : i32 to index
    %c0_5 = arith.constant 0 : index
    %9 = vector.load %arg3[%8, %c0_5] : memref<128x128xf32, #tpu.memory_space<vmem>>, vector<128x128xf32>
    %c0_6 = arith.constant 0 : index
    %c0_7 = arith.constant 0 : index
    %10 = vector.load %arg2[%c0_6, %c0_7] : memref<128x128xbf16, #tpu.memory_space<vmem>>, vector<128x128xbf16>
    %cst_8 = arith.constant 0.000000e+00 : bf16
    %11 = vector.broadcast %cst_8 : bf16 to vector<128x128xbf16>
    %12 = arith.cmpf ogt, %10, %11 : vector<128x128xbf16>
    %c0_9 = arith.constant 0 : index
    %c0_10 = arith.constant 0 : index
    %13 = vector.load %arg1[%c0_9, %c0_10] : memref<128x128xf32, #tpu.memory_space<vmem>>, vector<128x128xf32>
    %cst_11 = arith.constant -1.000000e+30 : f32
    %14 = vector.broadcast %cst_11 : f32 to vector<128x128xf32>
    %15 = arith.select %12, %13, %14 : vector<128x128xi1>, vector<128x128xf32>
    %cst_12 = arith.constant dense<0xFF800000> : vector<128xf32>
    %16 = vector.multi_reduction <maximumf>, %15, %cst_12 [1] : vector<128x128xf32> to vector<128xf32>
    %17 = vector.shape_cast %16 : vector<128xf32> to vector<128x1xf32>
    %18 = vector.broadcast %17 : vector<128x1xf32> to vector<128x128xf32>
    %19 = arith.subf %15, %18 : vector<128x128xf32>
    %20 = math.exp %19 : vector<128x128xf32>
    %cst_13 = arith.constant 0.000000e+00 : f32
    %21 = vector.broadcast %cst_13 : f32 to vector<128x128xf32>
    %22 = arith.select %12, %20, %21 : vector<128x128xi1>, vector<128x128xf32>
    %cst_14 = arith.constant dense<0.000000e+00> : vector<128xf32>
    %23 = vector.multi_reduction <add>, %22, %cst_14 [1] : vector<128x128xf32> to vector<128xf32>
    %24 = vector.shape_cast %23 : vector<128xf32> to vector<128x1xf32>
    %cst_15 = arith.constant 1.000000e-30 : f32
    %25 = vector.broadcast %cst_15 : f32 to vector<128x1xf32>
    %26 = arith.maximumf %24, %25 : vector<128x1xf32>
    %27 = tpu.reciprocal %26 {approx = true} : vector<128x1xf32> -> vector<128x1xf32>
    %28 = arith.mulf %26, %27 : vector<128x1xf32>
    %cst_16 = arith.constant 2.000000e+00 : f32
    %29 = vector.broadcast %cst_16 : f32 to vector<128x1xf32>
    %30 = arith.subf %29, %28 : vector<128x1xf32>
    %31 = arith.mulf %27, %30 : vector<128x1xf32>
    %32 = vector.broadcast %31 : vector<128x1xf32> to vector<128x128xf32>
    %33 = arith.mulf %22, %32 : vector<128x128xf32>
    %cst_17 = arith.constant dense<0.000000e+00> : vector<128x128xf32>
    %34 = tpu.matmul %33, %5, %cst_17 {dimension_numbers = #tpu.dot_dimension_numbers<[1], [0], [0], [1], [0, 0, 1, 1], [], []>} : vector<128x128xf32>, vector<128x128xf32>, vector<128x128xf32> -> vector<128x128xf32>
    %cst_18 = arith.constant 0.000000e+00 : f32
    %35 = vector.broadcast %cst_18 : f32 to vector<128x128xf32>
    %36 = arith.cmpf ogt, %34, %35 : vector<128x128xf32>
    %cst_19 = arith.constant 0.000000e+00 : f32
    %37 = vector.broadcast %cst_19 : f32 to vector<128x128xf32>
    %38 = arith.minimumf %34, %37 : vector<128x128xf32>
    %39 = math.exp %38 : vector<128x128xf32>
    %cst_20 = arith.constant 1.000000e+00 : f32
    %40 = vector.broadcast %cst_20 : f32 to vector<128x128xf32>
    %41 = arith.subf %39, %40 : vector<128x128xf32>
    %42 = arith.select %36, %34, %41 : vector<128x128xi1>, vector<128x128xf32>
    %c0_21 = arith.constant 0 : index
    %c0_22 = arith.constant 0 : index
    %43 = vector.load %arg6[%c0_21, %c0_22] : memref<128x384xf32, #tpu.memory_space<vmem>>, vector<128x384xf32>
    %cst_23 = arith.constant dense<0.000000e+00> : vector<128x384xf32>
    %44 = tpu.matmul %42, %43, %cst_23 {dimension_numbers = #tpu.dot_dimension_numbers<[1], [0], [0], [1], [0, 0, 1, 1], [], []>} : vector<128x128xf32>, vector<128x384xf32>, vector<128x384xf32> -> vector<128x384xf32>
    %c0_24 = arith.constant 0 : index
    %c0_25 = arith.constant 0 : index
    %45 = vector.load %arg7[%c0_24, %c0_25] : memref<1x384xf32, #tpu.memory_space<vmem>>, vector<1x384xf32>
    %46 = vector.broadcast %45 : vector<1x384xf32> to vector<128x384xf32>
    %47 = arith.addf %44, %46 : vector<128x384xf32>
    %c0_26 = arith.constant 0 : index
    %c0_27 = arith.constant 0 : index
    %48 = vector.load %arg8[%c0_26, %c0_27] : memref<128x384xf32, #tpu.memory_space<vmem>>, vector<128x384xf32>
    %cst_28 = arith.constant dense<0.000000e+00> : vector<128x384xf32>
    %49 = tpu.matmul %9, %48, %cst_28 {dimension_numbers = #tpu.dot_dimension_numbers<[1], [0], [0], [1], [0, 0, 1, 1], [], []>} : vector<128x128xf32>, vector<128x384xf32>, vector<128x384xf32> -> vector<128x384xf32>
    %c0_29 = arith.constant 0 : index
    %c0_30 = arith.constant 0 : index
    %50 = vector.load %arg9[%c0_29, %c0_30] : memref<1x384xf32, #tpu.memory_space<vmem>>, vector<1x384xf32>
    %51 = vector.broadcast %50 : vector<1x384xf32> to vector<128x384xf32>
    %52 = arith.addf %49, %51 : vector<128x384xf32>
    %53 = vector.extract_strided_slice %47 {offsets = [0, 0], sizes = [128, 128], strides = [1, 1]} : vector<128x384xf32> to vector<128x128xf32>
    %54 = vector.extract_strided_slice %52 {offsets = [0, 0], sizes = [128, 128], strides = [1, 1]} : vector<128x384xf32> to vector<128x128xf32>
    %55 = arith.addf %53, %54 : vector<128x128xf32>
    %56 = arith.negf %55 : vector<128x128xf32>
    %57 = math.exp %56 : vector<128x128xf32>
    %cst_31 = arith.constant 1.000000e+00 : f32
    %58 = vector.broadcast %cst_31 : f32 to vector<128x128xf32>
    %59 = arith.addf %58, %57 : vector<128x128xf32>
    %60 = arith.divf %58, %59 : vector<128x128xf32>
    %61 = vector.extract_strided_slice %47 {offsets = [0, 128], sizes = [128, 128], strides = [1, 1]} : vector<128x384xf32> to vector<128x128xf32>
    %62 = vector.extract_strided_slice %52 {offsets = [0, 128], sizes = [128, 128], strides = [1, 1]} : vector<128x384xf32> to vector<128x128xf32>
    %63 = arith.addf %61, %62 : vector<128x128xf32>
    %64 = arith.negf %63 : vector<128x128xf32>
    %65 = math.exp %64 : vector<128x128xf32>
    %cst_32 = arith.constant 1.000000e+00 : f32
    %66 = vector.broadcast %cst_32 : f32 to vector<128x128xf32>
    %67 = arith.addf %66, %65 : vector<128x128xf32>
    %68 = arith.divf %66, %67 : vector<128x128xf32>
    %69 = vector.extract_strided_slice %47 {offsets = [0, 256], sizes = [128, 128], strides = [1, 1]} : vector<128x384xf32> to vector<128x128xf32>
    %70 = vector.extract_strided_slice %52 {offsets = [0, 256], sizes = [128, 128], strides = [1, 1]} : vector<128x384xf32> to vector<128x128xf32>
    %71 = arith.mulf %60, %70 : vector<128x128xf32>
    %72 = arith.addf %69, %71 : vector<128x128xf32>
    %73 = math.tanh %72 : vector<128x128xf32>
    %cst_33 = arith.constant 1.000000e+00 : f32
    %74 = vector.broadcast %cst_33 : f32 to vector<128x128xf32>
    %75 = arith.subf %74, %68 : vector<128x128xf32>
    %76 = arith.mulf %75, %73 : vector<128x128xf32>
    %77 = arith.mulf %68, %9 : vector<128x128xf32>
    %78 = arith.addf %76, %77 : vector<128x128xf32>
    %cst_34 = arith.constant 0.000000e+00 : f32
    %79 = vector.broadcast %cst_34 : f32 to vector<128x128xf32>
    %80 = arith.maximumf %78, %79 : vector<128x128xf32>
    %c0_35 = arith.constant 0 : index
    %c0_36 = arith.constant 0 : index
    %81 = vector.load %arg10[%c0_35, %c0_36] : memref<128x128xf32, #tpu.memory_space<vmem>>, vector<128x128xf32>
    tpu.vector_store %arg10[%c0_35, %c0_36], %80 {strides = array<i32>} : memref<128x128xf32, #tpu.memory_space<vmem>>, vector<128x128xf32>,
    return
  }
  func.func @transform_0(%arg0: i32) -> (i32, i32) {
    %c0_i32 = arith.constant 0 : i32
    %c0_i32_0 = arith.constant 0 : i32
    return %arg0, %c0_i32 : i32, i32
  }
  func.func @transform_1(%arg0: i32) -> (i32, i32) {
    %c0_i32 = arith.constant 0 : i32
    %c0_i32_0 = arith.constant 0 : i32
    return %arg0, %c0_i32 : i32, i32
  }
  func.func @transform_2(%arg0: i32) -> (i32, i32) {
    %c0_i32 = arith.constant 0 : i32
    %c0_i32_0 = arith.constant 0 : i32
    %c0_i32_1 = arith.constant 0 : i32
    return %c0_i32, %c0_i32_0 : i32, i32
  }
  func.func @transform_3(%arg0: i32) -> (i32, i32) {
    %c0_i32 = arith.constant 0 : i32
    %c0_i32_0 = arith.constant 0 : i32
    %c0_i32_1 = arith.constant 0 : i32
    return %c0_i32, %c0_i32_0 : i32, i32
  }
  func.func @transform_4(%arg0: i32) -> (i32, i32) {
    %c0_i32 = arith.constant 0 : i32
    %c0_i32_0 = arith.constant 0 : i32
    %c0_i32_1 = arith.constant 0 : i32
    return %c0_i32, %c0_i32_0 : i32, i32
  }
  func.func @transform_5(%arg0: i32) -> (i32, i32) {
    %c0_i32 = arith.constant 0 : i32
    %c0_i32_0 = arith.constant 0 : i32
    %c0_i32_1 = arith.constant 0 : i32
    return %c0_i32, %c0_i32_0 : i32, i32
  }
  func.func @transform_6(%arg0: i32) -> (i32, i32) {
    %c0_i32 = arith.constant 0 : i32
    %c0_i32_0 = arith.constant 0 : i32
    %c0_i32_1 = arith.constant 0 : i32
    return %c0_i32, %c0_i32_0 : i32, i32
  }
  func.func @transform_7(%arg0: i32) -> (i32, i32) {
    %c0_i32 = arith.constant 0 : i32
    %c0_i32_0 = arith.constant 0 : i32
    %c0_i32_1 = arith.constant 0 : i32
    return %c0_i32, %c0_i32_0 : i32, i32
  }
  func.func @transform_8(%arg0: i32) -> (i32, i32) {
    %c0_i32 = arith.constant 0 : i32
    %c0_i32_0 = arith.constant 0 : i32
    %c0_i32_1 = arith.constant 0 : i32
    return %c0_i32, %c0_i32_0 : i32, i32
  }
  func.func @transform_9(%arg0: i32) -> (i32, i32) {
    %c0_i32 = arith.constant 0 : i32
    %c0_i32_0 = arith.constant 0 : i32
    return %arg0, %c0_i32 : i32, i32
  }
}

</mosaic_0001>

<bundles_post_ra>
// kernel: tpu_custom_call.1
= control target key start
LH: loop header
LB: loop body
LE: loop exit
PB: predicated region body
PF: predicated region fallthrough
CT: control target
= control target key end

     0   :  { %14 = vsyncpa [#allocation3], 0  ;;  %s4168_s0 = inlined_call_operand.hbm [shape: f32[128,128], index: 0, kind: input, shape index: {}]   ;;  %s4169_s1 = inlined_call_operand.hbm [shape: bf16[128,128], index: 1, kind: input, shape index: {}]   ;;  %s4170_s2 = inlined_call_operand.hbm [shape: f32[128,128], index: 2, kind: input, shape index: {}]   ;;  %s4171_s3 = inlined_call_operand.hbm [shape: f32[128,128], index: 3, kind: input, shape index: {}]   ;;  %s4172_s4 = inlined_call_operand.hbm [shape: f32[1,128], index: 4, kind: input, shape index: {}]   ;;  %s4173_s5 = inlined_call_operand.hbm [shape: f32[128,384], index: 5, kind: input, shape index: {}]   ;;  %s4174_s6 = inlined_call_operand.vmem [shape: f32[1,384], index: 6, kind: input, shape index: {}]   ;;  %s4175_s7 = inlined_call_operand.hbm [shape: f32[128,384], index: 7, kind: input, shape index: {}]   ;;  %s4176_s8 = inlined_call_operand.vmem [shape: f32[1,384], index: 8, kind: input, shape index: {}]   ;;  %s4177_s9 = inlined_call_operand.hbm [shape: f32[128,128], index: 9, kind: output, shape index: {}]  }
   0x1   :  { %15 = vsyncpa [#allocation6], 0 }
   0x2   :  { %16 = vsyncpa [#allocation9], 0 }
   0x3   :  { %17 = vsyncpa [#allocation12], 0  ;;  %s36_s11 = sshll.u32 %s4169_s1, 4  ;;  %s37_s11 = int_to_ptr.hbm [resolvable:$true] %s36_s11 }
   0x4   :  { %18 = vsyncpa [#allocation4], 0  ;;  %s2608_s12 = smov [#allocation5]   ;;  %s2609_s14 = smov 64  }
   0x5   :  { %s38_s13 = sshll.u32 %s2608_s12, 4  ;;  %s2610_s15 = smov 4   ;;  %s39_s13 = int_to_ptr.vmem [resolvable:$true] %s38_s13 }
   0x6   :  { %44 = dma.hbm_to_vmem [thread:$0]  %s37_s11, 1024, %s39_s13, [#allocation6], %s2609_s14, %s2609_s14, %s2610_s15  }
   0x7   :  { %s62_s18 = sshll.u32 %s4171_s3, 4  ;;  %s2611_s19 = smov [#allocation8]   ;;  %s63_s18 = int_to_ptr.hbm [resolvable:$true] %s62_s18 }
   0x8   :  { %s64_s20 = sshll.u32 %s2611_s19, 4  ;;  %s86_s23 = sshll.u32 %s4173_s5, 4  ;;  %s65_s20 = int_to_ptr.vmem [resolvable:$true] %s64_s20  ;;  %s87_s23 = int_to_ptr.hbm [resolvable:$true] %s86_s23 }
   0x9   :  { %s2612_s1 = smov 128   ;;  %s2613_s24 = smov 8  }
   0xa   :  { %70 = dma.hbm_to_vmem [thread:$0]  %s63_s18, 2048, %s65_s20, [#allocation9], %s2612_s1, %s2612_s1, %s2613_s24  }
   0xb   :  { %s2614_s25 = smov [#allocation11]   ;;  %s23_s28 = sshll.u32 %s4168_s0, 4  ;;  %s24_s28 = int_to_ptr.hbm [resolvable:$true] %s23_s28 }
   0xc   :  { %s88_s26 = sshll.u32 %s2614_s25, 4  ;;  %s2615_s29 = smov 384   ;;  %s89_s26 = int_to_ptr.vmem [resolvable:$true] %s88_s26 }
   0xd   :  { %s2616_s30 = smov 24   ;;  %s2617_s5 = smov [#allocation2]  }
   0xe   :  { %94 = dma.hbm_to_vmem [thread:$0]  %s87_s23, 6144, %s89_s26, [#allocation12], %s2615_s29, %s2615_s29, %s2616_s30  }
   0xf   :  { %s25_s10 = sshll.u32 %s2617_s5, 4  ;;  %s49_s13 = sshll.u32 %s4170_s2, 4  ;;  %s26_s10 = int_to_ptr.vmem [resolvable:$true] %s25_s10  ;;  %s50_s13 = int_to_ptr.hbm [resolvable:$true] %s49_s13 }
  0x10   :  { %31 = dma.hbm_to_vmem [thread:$0]  %s24_s28, 2048, %s26_s10, [#allocation3], %s2612_s1, %s2612_s1, %s2613_s24  }
  0x11   :  { %s76_s0 = sshll.u32 %s4172_s4, 4  ;;  %s2618_s16 = smov [#allocation7]   ;;  %s77_s0 = int_to_ptr.hbm [resolvable:$true] %s76_s0 }
  0x12   :  { %s51_s17 = sshll.u32 %s2618_s16, 4  ;;  %s2619_s18 = smov [#allocation10]   ;;  %s52_s17 = int_to_ptr.vmem [resolvable:$true] %s51_s17 }
  0x13   :  { %57 = dma.hbm_to_vmem [thread:$0]  %s50_s13, 2048, %s52_s17, [#allocation6], %s2612_s1, %s2612_s1, %s2613_s24  }
  0x14   :  { %s78_s2 = sshll.u32 %s2619_s18, 4  ;;  %s101_s21 = sshll.u32 %s4175_s7, 4  ;;  %s79_s2 = int_to_ptr.vmem [resolvable:$true] %s78_s2  ;;  %s102_s21 = int_to_ptr.hbm [resolvable:$true] %s101_s21 }
  0x15   :  { %81 = dma.hbm_to_vmem [thread:$0]  %s77_s0, 16, %s79_s2, [#allocation9]  }
  0x16   :  { %s2620_s22 = smov [#allocation13]  }
  0x17   :  { %s103_s23 = sshll.u32 %s2620_s22, 4  ;;  %s104_s23 = int_to_ptr.vmem [resolvable:$true] %s103_s23 }
  0x18   :  { %109 = dma.hbm_to_vmem [thread:$0]  %s102_s21, 6144, %s104_s23, [#allocation12], %s2615_s29, %s2615_s29, %s2616_s30  }
  0x19   :  { %2598 = dma.done.wait [#allocation3], 2048  }
  0x1a   :  { %2599 = vsyncadd [#allocation3], 4294965248 }
  0x1b   :  { %2600 = dma.done.wait [#allocation6], 3072  }
  0x1c   :  { %2601 = vsyncadd [#allocation6], 4294964224 }
  0x1d   :  { %2602 = dma.done.wait [#allocation9], 2064  }
  0x1e   :  { %2603 = vsyncadd [#allocation9], 4294965232 }
  0x1f   :  { %2604 = dma.done.wait [#allocation12], 12288  }
  0x20   :  { %2605 = vsyncadd [#allocation12], 4294955008  ;;  %v171_v0 = vld [vmem:[#allocation8 + $0x78] sm:$0xff]  ;;  %v170_v1 = vld [vmem:[#allocation8 + $0x70] sm:$0xff]  ;;  %s2016_s28 = sshll.u32 %s4177_s9, 4  ;;  %s2017_s28 = int_to_ptr.hbm [resolvable:$true] %s2016_s28 }
  0x21   :  { %v2112_v2 = vld [vmem:[#allocation5 + $0x8] sm:$0xff]   ;;  %176 = vmatpush.msra.mxu0 %v171_v0  ;;  %v309_v4 = vld [vmem:[#allocation2 + $0x10] sm:$0xff]  ;;  %v2081_v5 = vld [vmem:[#allocation5] sm:$0xff]  }
  0x22   :  { %v2086_v3 = vunpack.c.l.bf16 %v2112_v2  ;;  %v2082_v6 = vunpack.c.l.bf16 %v2081_v5  ;;  %v307_v7 = vld [vmem:[#allocation2] sm:$0xff]  ;;  %v169_v8 = vld [vmem:[#allocation8 + $0x68] sm:$0xff]  ;;  %v2113_v10 = vld [vmem:[#allocation5 + $0x10] sm:$0xff]   ;;  %v2087_v11 = vunpack.c.h.bf16 %v2112_v2  ;;  %v2083_v17 = vunpack.c.h.bf16 %v2081_v5 }
  0x23   :  { %177 = vmatpush.msra.mxu0 %v170_v1  ;;  %v168_v14 = vld [vmem:[#allocation8 + $0x60] sm:$0xff]  ;;  %v2090_v15 = vunpack.c.l.bf16 %v2113_v10  ;;  %v167_v19 = vld [vmem:[#allocation8 + $0x58] sm:$0xff]  ;;  %v2091_v21 = vunpack.c.h.bf16 %v2113_v10  ;;  %v166_v25 = vld [vmem:[#allocation8 + $0x50] sm:$0xff] }
  0x24   :  { %vm2702_vm0 = vcmp.gt.f32.partialorder %v2086_v3, 0.0  ;;  %vm2710_vm1 = vcmp.gt.f32.partialorder %v2082_v6, 0.0  ;;  %v311_v16 = vld [vmem:[#allocation2 + $0x20] sm:$0xff]  ;;  %vm2728_vm3 = vcmp.gt.f32.partialorder %v2087_v11, 0.0  ;;  %v310_v24 = vld [vmem:[#allocation2 + $0x18] sm:$0xff]  ;;  %vm2733_vm4 = vcmp.gt.f32.partialorder %v2083_v17, 0.0 }
  0x25   :  { %v2708_v12 = vsel %vm2702_vm0, %v309_v4, -1e+30  ;;  %v2717_v18 = vsel %vm2710_vm1, %v307_v7, -1e+30  ;;  %178 = vmatpush.msra.mxu0 %v169_v8  ;;  %vm2720_vm2 = vcmp.gt.f32.partialorder %v2090_v15, 0.0  ;;  %v308_v27 = vld [vmem:[#allocation2 + $0x8] sm:$0xff] }
  0x26   :  { %343 = vmax.xlane.f32.xlu1 %v2708_v12  ;;  %339 = vmax.xlane.f32.xlu0 %v2717_v18  ;;  %v2726_v22 = vsel %vm2720_vm2, %v311_v16, -1e+30  ;;  %v165_v28 = vld [vmem:[#allocation8 + $0x48] sm:$0xff]  ;;  %vm2737_vm5 = vcmp.gt.f32.partialorder %v2091_v21, 0.0  ;;  %v2743_v31 = vsel %vm2728_vm3, %v310_v24, -1e+30 }
  0x27   :  { %179 = vmatpush.msra.mxu0 %v168_v14  ;;  %347 = vmax.xlane.f32.xlu2 %v2726_v22  ;;  %v312_v30 = vld [vmem:[#allocation2 + $0x28] sm:$0xff]  ;;  %v2114_v32 = vld [vmem:[#allocation5 + $0x18] sm:$0xff]   ;;  %v2747_v33 = vsel %vm2733_vm4, %v308_v27, -1e+30  ;;  %v164_v34 = vld [vmem:[#allocation8 + $0x40] sm:$0xff] }
  0x28   :  { %v2094_v35 = vunpack.c.l.bf16 %v2114_v32  ;;  %v2751_v36 = vsel %vm2737_vm5, %v312_v30, -1e+30  ;;  %v163_v37 = vld [vmem:[#allocation8 + $0x38] sm:$0xff]  ;;  %v2095_v38 = vunpack.c.h.bf16 %v2114_v32  ;;  %v162_v39 = vld [vmem:[#allocation8 + $0x30] sm:$0xff]  ;;  %v161_v42 = vld [vmem:[#allocation8 + $0x28] sm:$0xff] }
  0x29   :  { %180 = vmatpush.msra.mxu0 %v167_v19  ;;  %v313_v41 = vld [vmem:[#allocation2 + $0x30] sm:$0xff]  ;;  %v314_v44 = vld [vmem:[#allocation2 + $0x38] sm:$0xff]  ;;  %v160_v46 = vld [vmem:[#allocation8 + $0x20] sm:$0xff] }
  0x2a   :  { %vm2756_vm6 = vcmp.gt.f32.partialorder %v2094_v35, 0.0  ;;  %vm2760_vm7 = vcmp.gt.f32.partialorder %v2095_v38, 0.0  ;;  %v159_v48 = vld [vmem:[#allocation8 + $0x18] sm:$0xff]  ;;  %v158_v49 = vld [vmem:[#allocation8 + $0x10] sm:$0xff]  ;;  %v157_v50 = vld [vmem:[#allocation8 + $0x8] sm:$0xff] }
  0x2b   :  { %181 = vmatpush.msra.mxu0 %v166_v25  ;;  %v2766_v45 = vsel %vm2756_vm6, %v313_v41, -1e+30  ;;  %v2770_v47 = vsel %vm2760_vm7, %v314_v44, -1e+30  ;;  %v156_v51 = vld [vmem:[#allocation8] sm:$0xff]  ;;  %v141_v53 = vld [vmem:[#allocation7 + $0x8] sm:$0xff] }
  0x2c   :  { %v140_v52 = vld [vmem:[#allocation7] sm:$0xff]  ;;  %v142_v54 = vld [vmem:[#allocation7 + $0x10] sm:$0xff]  ;;  %v143_v55 = vld [vmem:[#allocation7 + $0x18] sm:$0xff] }
  0x2d   :  { %182 = vmatpush.msra.mxu0 %v165_v28  ;;  %v144_v56 = vld [vmem:[#allocation7 + $0x20] sm:$0xff]  ;;  %v145_v57 = vld [vmem:[#allocation7 + $0x28] sm:$0xff]  ;;  %v146_v58 = vld [vmem:[#allocation7 + $0x30] sm:$0xff] }
  0x2e   :  { %345 = vmax.xlane.f32.xlu1 %v2743_v31  ;;  %341 = vmax.xlane.f32.xlu0 %v2747_v33  ;;  %v147_v59 = vld [vmem:[#allocation7 + $0x38] sm:$0xff]  ;;  %v148_v60 = vld [vmem:[#allocation7 + $0x40] sm:$0xff]  ;;  %v149_v61 = vld [vmem:[#allocation7 + $0x48] sm:$0xff] }
  0x2f   :  { %183 = vmatpush.msra.mxu0 %v164_v34  ;;  %349 = vmax.xlane.f32.xlu2 %v2751_v36  ;;  %v150_v62 = vld [vmem:[#allocation7 + $0x50] sm:$0xff]  ;;  %v151_v63 = vld [vmem:[#allocation7 + $0x58] sm:$0xff]  ;;  %v152_v7 = vld [vmem:[#allocation7 + $0x60] sm:$0xff] }
  0x30   :  { %v2116_v10 = vld [vmem:[#allocation5 + $0x28] sm:$0xff]   ;;  %v2115_v14 = vld [vmem:[#allocation5 + $0x20] sm:$0xff]   ;;  %v317_v9 = vld [vmem:[#allocation2 + $0x50] sm:$0xff] }
  0x31   :  { %184 = vmatpush.msra.mxu0 %v163_v37  ;;  %v2102_v19 = vunpack.c.l.bf16 %v2116_v10  ;;  %v2098_v27 = vunpack.c.l.bf16 %v2115_v14  ;;  %v153_v30 = vld [vmem:[#allocation7 + $0x68] sm:$0xff]  ;;  %v315_v35 = vld [vmem:[#allocation2 + $0x40] sm:$0xff] }
  0x32   :  { %v320_v23 = vld [vmem:[#allocation2 + $0x68] sm:$0xff] }
  0x33   :  { %185 = vmatpush.msra.mxu0 %v162_v39  ;;  %vm2789_vm8 = vcmp.gt.f32.partialorder %v2102_v19, 0.0  ;;  %vm2793_vm9 = vcmp.gt.f32.partialorder %v2098_v27, 0.0  ;;  %v2099_v39 = vunpack.c.h.bf16 %v2115_v14 }
  0x34   :  { %v2804_v37 = vsel %vm2793_vm9, %v315_v35, -1e+30 }
  0x35   :  { %186 = vmatpush.msra.mxu0 %v161_v42  ;;  %v154_v42 = vld [vmem:[#allocation7 + $0x70] sm:$0xff]  ;;  %vm2813_vm10 = vcmp.gt.f32.partialorder %v2099_v39, 0.0 }
  0x36   :  { %351 = vmax.xlane.f32.xlu0 %v2766_v45 }
  0x37   :  { %187 = vmatpush.msra.mxu0 %v160_v46  ;;  %353 = vmax.xlane.f32.xlu2 %v2770_v47 }
  0x39   :  { %188 = vmatpush.msra.mxu0 %v159_v48 }
  0x3b   :  { %189 = vmatpush.msra.mxu0 %v158_v49 }
  0x3d   :  { %190 = vmatpush.msra.mxu0 %v157_v50  ;;  %v316_v50 = vld [vmem:[#allocation2 + $0x48] sm:$0xff] }
  0x3f   :  { %191 = vmatpush.msra.mxu0 %v156_v51  ;;  %v2117_v51 = vld [vmem:[#allocation5 + $0x30] sm:$0xff]  }
  0x40   :  { %192 = vmatmul.f32.vlgmr.msra.gmra.mxu0 %v140_v52 }
  0x48   :  { %195 = vmatmul.f32.gmra.mxu0 %v141_v53 }
  0x50   :  { %198 = vmatmul.f32.gmra.mxu0 %v142_v54  ;;  %v2828_v54 = vsel %vm2813_vm10, %v316_v50, -1e+30 }
  0x58   :  { %201 = vmatmul.f32.gmra.mxu0 %v143_v55  ;;  %v2107_v55 = vunpack.c.h.bf16 %v2117_v51 }
  0x5a   :  { %vm2833_vm11 = vcmp.gt.f32.partialorder %v2107_v55, 0.0 }
  0x60   :  { %204 = vmatmul.f32.gmra.mxu0 %v144_v56  ;;  %v2103_v56 = vunpack.c.h.bf16 %v2116_v10 }
  0x62   :  { %vm2837_vm12 = vcmp.gt.f32.partialorder %v2103_v56, 0.0 }
  0x68   :  { %207 = vmatmul.f32.gmra.mxu0 %v145_v57  ;;  %v155_v57 = vld [vmem:[#allocation7 + $0x78] sm:$0xff] }
  0x70   :  { %210 = vmatmul.f32.gmra.mxu0 %v146_v58 }
  0x78   :  { %213 = vmatmul.f32.gmra.mxu0 %v147_v59 }
  0x80   :  { %216 = vmatmul.f32.gmra.mxu0 %v148_v60 }
  0x88   :  { %219 = vmatmul.f32.gmra.mxu0 %v149_v61  ;;  %v318_v61 = vld [vmem:[#allocation2 + $0x58] sm:$0xff] }
  0x90   :  { %222 = vmatmul.f32.gmra.mxu0 %v150_v62  ;;  %v2843_v62 = vsel %vm2833_vm11, %v320_v23, -1e+30 }
  0x98   :  { %225 = vmatmul.f32.gmra.mxu0 %v151_v63 }
  0x99   :  { %v344_v0 = vpop.xlane.xlu1 %343  ;;  %v340_v2 = vpop.xlane.xlu0 %339 }
  0x9a   :  { %v373_v1 = vsub.f32 %v2708_v12, %v344_v0  ;;  %v371_v3 = vsub.f32 %v2717_v18, %v340_v2  ;;  %v348_v5 = vpop.xlane.xlu2 %347  ;;  %v2848_v0 = vsel %vm2837_vm12, %v318_v61, -1e+30  ;;  %v2106_v2 = vunpack.c.l.bf16 %v2117_v51 }
  0x9b   :  { %v375_v13 = vsub.f32 %v2726_v22, %v348_v5 }
  0x9c   :  { %v391_v4 = vmul.f32 1.442695, %v373_v1  ;;  %v387_v6 = vmul.f32 1.442695, %v371_v3  ;;  %vm2859_vm13 = vcmp.gt.f32.partialorder %v2106_v2, 0.0 }
  0x9d   :  { %v395_v44 = vmul.f32 1.442695, %v375_v13 }
  0x9e   :  { %2134 = vpow2.f32 %v391_v4 }
  0x9f   :  { %2136 = vpow2.f32 %v387_v6  ;;  %v319_v6 = vld [vmem:[#allocation2 + $0x60] sm:$0xff] }
  0xa0   :  { %228 = vmatmul.f32.gmra.mxu0 %v152_v7  ;;  %v2118_v7 = vld [vmem:[#allocation5 + $0x38] sm:$0xff]   ;;  %v2865_v20 = vsel %vm2859_vm13, %v319_v6, -1e+30 }
  0xa1   :  { %v346_v8 = vpop.xlane.xlu1 %345  ;;  %v342_v11 = vpop.xlane.xlu0 %341  ;;  %v2110_v10 = vunpack.c.l.bf16 %v2118_v7 }
  0xa2   :  { %v372_v15 = vsub.f32 %v2747_v33, %v342_v11  ;;  %v374_v16 = vsub.f32 %v2743_v31, %v346_v8  ;;  %v350_v12 = vpop.xlane.xlu2 %349 }
  0xa3   :  { %v376_v25 = vsub.f32 %v2751_v36, %v350_v12  ;;  %v2800_v36 = vsel %vm2789_vm8, %v317_v9, -1e+30  ;;  %vm2875_vm14 = vcmp.gt.f32.partialorder %v2110_v10, 0.0  ;;  %v2111_v12 = vunpack.c.h.bf16 %v2118_v7 }
  0xa4   :  { %v2135_v17 = vpop.eup %2134  ;;  %v389_v18 = vmul.f32 1.442695, %v372_v15  ;;  %v393_v32 = vmul.f32 1.442695, %v374_v16  ;;  %v321_v16 = vld [vmem:[#allocation2 + $0x70] sm:$0xff] }
  0xa5   :  { %v2137_v21 = vpop.eup %2136  ;;  %v2780_v24 = vsel %vm2702_vm0, %v2135_v17, 0.0  ;;  %v397_v31 = vmul.f32 1.442695, %v376_v25  ;;  %v2885_v40 = vsel %vm2875_vm14, %v321_v16, -1e+30  ;;  %vm2891_vm15 = vcmp.gt.f32.partialorder %v2111_v12, 0.0 }
  0xa6   :  { %439 = vadd.xlane.f32.xlu2 %v2780_v24  ;;  %v2786_v28 = vsel %vm2710_vm1, %v2137_v21, 0.0  ;;  %2138 = vpow2.f32 %v389_v18  ;;  %v322_v18 = vld [vmem:[#allocation2 + $0x78] sm:$0xff] }
  0xa7   :  { %435 = vadd.xlane.f32.xlu1 %v2786_v28  ;;  %2140 = vpow2.f32 %v397_v31  ;;  %v2897_v43 = vsel %vm2891_vm15, %v322_v18, -1e+30 }
  0xa8   :  { %231 = vmatmul.f32.gmra.mxu0 %v153_v30  ;;  %2142 = vpow2.f32 %v393_v32 }
  0xa9   :  { %v352_v46 = vpop.xlane.xlu0 %351  ;;  %2144 = vpow2.f32 %v395_v44 }
  0xaa   :  { %v377_v52 = vsub.f32 %v2766_v45, %v352_v46  ;;  %v354_v58 = vpop.xlane.xlu2 %353 }
  0xab   :  { %v378_v63 = vsub.f32 %v2770_v47, %v354_v58 }
  0xac   :  { %v2139_v38 = vpop.eup %2138  ;;  %v399_v29 = vmul.f32 1.442695, %v377_v52 }
  0xad   :  { %v2809_v41 = vsel %vm2733_vm4, %v2139_v38, 0.0  ;;  %v2141_v22 = vpop.eup %2140  ;;  %v401_v4 = vmul.f32 1.442695, %v378_v63 }
  0xae   :  { %359 = vmax.xlane.f32.xlu2 %v2800_v36  ;;  %437 = vadd.xlane.f32.xlu0 %v2809_v41  ;;  %v2143_v48 = vpop.eup %2142  ;;  %v2819_v26 = vsel %vm2737_vm5, %v2141_v22, 0.0  ;;  %2146 = vpow2.f32 %v399_v29 }
  0xaf   :  { %355 = vmax.xlane.f32.xlu1 %v2804_v37  ;;  %v2824_v53 = vsel %vm2728_vm3, %v2143_v48, 0.0  ;;  %v2145_v59 = vpop.eup %2144  ;;  %2148 = vpow2.f32 %v401_v4 }
  0xb0   :  { %234 = vmatmul.f32.gmra.mxu0 %v154_v42  ;;  %v2852_v1 = vsel %vm2720_vm2, %v2145_v59, 0.0 }
  0xb4   :  { %v2147_v5 = vpop.eup %2146 }
  0xb5   :  { %v2869_v8 = vsel %vm2756_vm6, %v2147_v5, 0.0  ;;  %v2149_v14 = vpop.eup %2148 }
  0xb6   :  { %445 = vadd.xlane.f32.xlu2 %v2819_v26  ;;  %357 = vmax.xlane.f32.xlu0 %v2828_v54  ;;  %v2881_v17 = vsel %vm2760_vm7, %v2149_v14, 0.0  ;;  %v2942_v14 = vld [vmem:[#allocation10] ss:$0 sm:$0xff] }
  0xb7   :  { %441 = vadd.xlane.f32.xlu1 %v2824_v53 }
  0xb8   :  { %237 = vmatmul.f32.gmra.mxu0 %v155_v57 }
  0xbd   :  { %v2855_v3 = vpop.f32.mrf.mxu0 }
  0xbe   :  { %365 = vmax.xlane.f32.xlu2 %v2843_v62  ;;  %443 = vadd.xlane.f32.xlu0 %v2852_v1 }
  0xbf   :  { %361 = vmax.xlane.f32.xlu1 %v2848_v0 }
  0xc5   :  { %v2871_v11 = vpop.f32.mrf.mxu0 }
  0xc6   :  { %363 = vmax.xlane.f32.xlu0 %v2865_v20 }
  0xc7   :  { %447 = vadd.xlane.f32.xlu1 %v2869_v8 }
  0xcd   :  { %v2887_v19 = vpop.f32.mrf.mxu0 }
  0xce   :  { %449 = vadd.xlane.f32.xlu0 %v2881_v17 }
  0xcf   :  { %367 = vmax.xlane.f32.xlu1 %v2885_v40 }
  0xd5   :  { %v2899_v25 = vpop.f32.mrf.mxu0 }
  0xd6   :  { %369 = vmax.xlane.f32.xlu0 %v2897_v43 }
  0xdd   :  { %v2902_v27 = vpop.f32.mrf.mxu0 }
  0xe5   :  { %v2904_v30 = vpop.f32.mrf.mxu0 }
  0xe6   :  { %v209_v47 = vadd.f32 %v2942_v14, %v2904_v30  ;;  %v203_v30 = vadd.f32 %v2942_v14, %v2899_v25  ;;  %v194_v25 = vadd.f32 %v2942_v14, %v2855_v3 }
  0xed   :  { %v2906_v31 = vpop.f32.mrf.mxu0 }
  0xf5   :  { %v2908_v32 = vpop.f32.mrf.mxu0 }
  0xfd   :  { %v2910_v9 = vpop.f32.mrf.mxu0 }
 0x105   :  { %v2912_v35 = vpop.f32.mrf.mxu0 }
 0x10d   :  { %v2914_v13 = vpop.f32.mrf.mxu0 }
 0x10e   :  { %v224_v45 = vadd.f32 %v2942_v14, %v2914_v13 }
 0x115   :  { %v226_v38 = vpop.f32.mrf.mxu0 }
 0x119   :  { %v2916_v39 = vpop.xlane.xlu2 %439 }
 0x11a   :  { %v2918_v42 = vpop.xlane.xlu1 %435 }
 0x11d   :  { %v229_v44 = vpop.f32.mrf.mxu0 }
 0x121   :  { %v360_v22 = vpop.xlane.xlu2 %359  ;;  %v2920_v48 = vpop.xlane.xlu0 %437 }
 0x122   :  { %v356_v46 = vpop.xlane.xlu1 %355  ;;  %v381_v50 = vsub.f32 %v2800_v36, %v360_v22 }
 0x123   :  { %v379_v51 = vsub.f32 %v2804_v37, %v356_v46 }
 0x124   :  { %v407_v56 = vmul.f32 1.442695, %v381_v50 }
 0x125   :  { %v403_v52 = vmul.f32 1.442695, %v379_v51  ;;  %v232_v55 = vpop.f32.mrf.mxu0 }
 0x127   :  { %2150 = vpow2.f32 %v403_v52 }
 0x128   :  { %2152 = vpow2.f32 %v407_v56 }
 0x129   :  { %v2924_v57 = vpop.xlane.xlu2 %445  ;;  %v358_v23 = vpop.xlane.xlu0 %357 }
 0x12a   :  { %v2926_v29 = vpop.xlane.xlu1 %441  ;;  %v380_v58 = vsub.f32 %v2828_v54, %v358_v23  ;;  %v467_v23 = vmax.f32 %v2918_v42, 1e-30 }
 0x12c   :  { %v405_v61 = vmul.f32 1.442695, %v380_v58  ;;  %v230_v58 = vadd.f32 %v2942_v14, %v229_v44  ;;  %v221_v44 = vadd.f32 %v2942_v14, %v2912_v35  ;;  %v215_v35 = vadd.f32 %v2942_v14, %v2908_v32 }
 0x12d   :  { %v2151_v59 = vpop.eup %2150  ;;  %v235_v36 = vpop.f32.mrf.mxu0 }
 0x12e   :  { %v2931_v63 = vsel %vm2793_vm9, %v2151_v59, 0.0  ;;  %2154 = vpow2.f32 %v405_v61  ;;  %v2153_v37 = vpop.eup %2152  ;;  %v236_v18 = vadd.f32 %v2942_v14, %v235_v36 }
 0x12f   :  { %451 = vadd.xlane.f32.xlu2 %v2931_v63  ;;  %v2940_v10 = vsel %vm2789_vm8, %v2153_v37, 0.0  ;;  %v468_v37 = vmax.f32 %v2920_v48, 1e-30 }
 0x131   :  { %v366_v2 = vpop.xlane.xlu2 %365  ;;  %v2935_v6 = vpop.xlane.xlu0 %443 }
 0x132   :  { %v384_v4 = vsub.f32 %v2843_v62, %v366_v2  ;;  %v362_v5 = vpop.xlane.xlu1 %361 }
 0x133   :  { %v382_v7 = vsub.f32 %v2848_v0, %v362_v5  ;;  %v233_v0 = vadd.f32 %v2942_v14, %v232_v55 }
 0x134   :  { %v413_v54 = vmul.f32 1.442695, %v384_v4  ;;  %v2155_v34 = vpop.eup %2154 }
 0x135   :  { %v409_v16 = vmul.f32 1.442695, %v382_v7  ;;  %v2946_v12 = vsel %vm2813_vm10, %v2155_v34, 0.0  ;;  %v238_v62 = vpop.f32.mrf.mxu0  ;;  %v206_v34 = vadd.f32 %v2942_v14, %v2902_v27  ;;  %v197_v27 = vadd.f32 %v2942_v14, %v2871_v11 }
 0x136   :  { %2156 = vpow2.f32 %v413_v54  ;;  %453 = vadd.xlane.f32.xlu1 %v2946_v12  ;;  %v239_v33 = vadd.f32 %v2942_v14, %v238_v62  ;;  %v469_v54 = vmax.f32 %v2916_v39, 1e-30  ;;  %v200_v39 = vadd.f32 %v2942_v14, %v2887_v19 }
 0x137   :  { %2158 = vpow2.f32 %v409_v16  ;;  %455 = vadd.xlane.f32.xlu2 %v2940_v10 }
 0x138   :  { %563 = vmatpush.msra.mxu1 %v239_v33 }
 0x139   :  { %v364_v46 = vpop.xlane.xlu0 %363 }
 0x13a   :  { %v2953_v22 = vpop.xlane.xlu1 %447  ;;  %v383_v49 = vsub.f32 %v2865_v20, %v364_v46  ;;  %564 = vmatpush.msra.mxu1 %v236_v18  ;;  %v227_v20 = vadd.f32 %v2942_v14, %v226_v38  ;;  %v218_v38 = vadd.f32 %v2942_v14, %v2910_v9  ;;  %v212_v9 = vadd.f32 %v2942_v14, %v2906_v31 }
 0x13b   :  { %v470_v18 = vmax.f32 %v2926_v29, 1e-30  ;;  %v471_v29 = vmax.f32 %v2935_v6, 1e-30  ;;  %v473_v6 = vmax.f32 %v2953_v22, 1e-30 }
 0x13c   :  { %v2157_v50 = vpop.eup %2156  ;;  %v411_v52 = vmul.f32 1.442695, %v383_v49  ;;  %565 = vmatpush.msra.mxu1 %v233_v0 }
 0x13d   :  { %v2159_v51 = vpop.eup %2158  ;;  %v2958_v56 = vsel %vm2833_vm11, %v2157_v50, 0.0 }
 0x13e   :  { %v2964_v55 = vsel %vm2837_vm12, %v2159_v51, 0.0  ;;  %2160 = vpow2.f32 %v411_v52  ;;  %566 = vmatpush.msra.mxu1 %v230_v58  ;;  %v472_v52 = vmax.f32 %v2924_v57, 1e-30 }
 0x13f   :  { %461 = vadd.xlane.f32.xlu2 %v2958_v56  ;;  %457 = vadd.xlane.f32.xlu0 %v2964_v55  ;;  %2162 = vrcp.f32 %v467_v23 }
 0x140   :  { %567 = vmatpush.msra.mxu1 %v227_v20 }
 0x141   :  { %v2971_v42 = vpop.xlane.xlu0 %449 }
 0x142   :  { %v368_v59 = vpop.xlane.xlu1 %367  ;;  %568 = vmatpush.msra.mxu1 %v224_v45  ;;  %v474_v57 = vmax.f32 %v2971_v42, 1e-30 }
 0x143   :  { %v385_v60 = vsub.f32 %v2885_v40, %v368_v59 }
 0x144   :  { %v2161_v61 = vpop.eup %2160  ;;  %569 = vmatpush.msra.mxu1 %v221_v44 }
 0x145   :  { %v415_v36 = vmul.f32 1.442695, %v385_v60  ;;  %v2981_v13 = vsel %vm2859_vm13, %v2161_v61, 0.0  ;;  %v2163_v40 = vpop.eup %2162 }
 0x146   :  { %459 = vadd.xlane.f32.xlu1 %v2981_v13  ;;  %570 = vmatpush.msra.mxu1 %v218_v38  ;;  %v499_v48 = vmul.f32 %v2163_v40, %v467_v23 }
 0x147   :  { %2164 = vpow2.f32 %v415_v36 }
 0x148   :  { %2166 = vrcp.f32 %v468_v37  ;;  %571 = vmatpush.msra.mxu1 %v215_v35  ;;  %v515_v31 = vsub.f32 2.0, %v499_v48 }
 0x149   :  { %v370_v2 = vpop.xlane.xlu0 %369 }
 0x14a   :  { %v386_v4 = vsub.f32 %v2897_v43, %v370_v2  ;;  %572 = vmatpush.msra.mxu1 %v212_v9  ;;  %v531_v16 = vmul.f32 %v2163_v40, %v515_v31  ;;  %v767_v31 = vld [vmem:[#allocation11 + $0x158] sm:$0xff] }
 0x14c   :  { %v417_v7 = vmul.f32 1.442695, %v386_v4  ;;  %573 = vmatpush.msra.mxu1 %v209_v47  ;;  %v547_v19 = vmul.f32 %v531_v16, %v2786_v28 }
 0x14d   :  { %v2165_v5 = vpop.eup %2164 }
 0x14e   :  { %v2994_v32 = vsel %vm2875_vm14, %v2165_v5, 0.0  ;;  %2168 = vpow2.f32 %v417_v7  ;;  %v2167_v43 = vpop.eup %2166  ;;  %574 = vmatpush.msra.mxu1 %v206_v34  ;;  %v769_v7 = vld [vmem:[#allocation11 + $0x168] sm:$0xff]  ;;  %v771_v34 = vld [vmem:[#allocation11 + $0x178] sm:$0xff] }
 0x14f   :  { %463 = vadd.xlane.f32.xlu0 %v2994_v32  ;;  %2170 = vrcp.f32 %v469_v54  ;;  %v500_v15 = vmul.f32 %v2167_v43, %v468_v37  ;;  %780 = vmatpush.msra.mxu2 %v769_v7  ;;  %v1011_v7 = vld [vmem:[#allocation13 + $0x120] sm:$0xff] }
 0x150   :  { %575 = vmatpush.msra.mxu1 %v203_v30  ;;  %2172 = vrcp.f32 %v470_v18  ;;  %910 = vmatpush.msrb.mxu0 %v771_v34  ;;  %v736_v34 = vld [vmem:[#allocation11 + $0x60] sm:$0xff] }
 0x151   :  { %v516_v0 = vsub.f32 2.0, %v500_v15  ;;  %2174 = vrcp.f32 %v471_v29  ;;  %v765_v15 = vld [vmem:[#allocation11 + $0x148] sm:$0xff] }
 0x152   :  { %576 = vmatpush.msra.mxu1 %v200_v39  ;;  %2176 = vrcp.f32 %v472_v52  ;;  %v763_v39 = vld [vmem:[#allocation11 + $0x138] sm:$0xff] }
 0x153   :  { %v532_v49 = vmul.f32 %v2167_v43, %v516_v0  ;;  %2178 = vrcp.f32 %v473_v6  ;;  %v768_v43 = vld [vmem:[#allocation11 + $0x160] sm:$0xff]  ;;  %v761_v0 = vld [vmem:[#allocation11 + $0x128] sm:$0xff] }
 0x154   :  { %v2169_v62 = vpop.eup %2168  ;;  %577 = vmatpush.msra.mxu1 %v197_v27  ;;  %2180 = vrcp.f32 %v474_v57  ;;  %911 = vmatpush.msrb.mxu0 %v768_v43  ;;  %v1008_v43 = vld [vmem:[#allocation13 + $0x108] sm:$0xff] }
 0x155   :  { %v3008_v33 = vsel %vm2891_vm15, %v2169_v62, 0.0  ;;  %v2171_v46 = vpop.eup %2170  ;;  %v548_v21 = vmul.f32 %v532_v49, %v2809_v41  ;;  %v758_v49 = vld [vmem:[#allocation11 + $0x110] sm:$0xff] }
 0x156   :  { %465 = vadd.xlane.f32.xlu1 %v3008_v33  ;;  %578 = vmatpush.msra.mxu1 %v194_v25  ;;  %v501_v11 = vmul.f32 %v2171_v46, %v469_v54  ;;  %v2173_v51 = vpop.eup %2172  ;;  %v770_v54 = vld [vmem:[#allocation11 + $0x170] sm:$0xff]  ;;  %v760_v25 = vld [vmem:[#allocation11 + $0x120] sm:$0xff] }
 0x157   :  { %579 = vmatmul.f32.vlgmr.msra.gmra.mxu1 %v547_v19  ;;  %v502_v3 = vmul.f32 %v2173_v51, %v470_v18  ;;  %v2175_v58 = vpop.eup %2174  ;;  %845 = vmatpush.msra.mxu3 %v770_v54  ;;  %v762_v19 = vld [vmem:[#allocation11 + $0x130] sm:$0xff] }
 0x158   :  { %v517_v50 = vsub.f32 2.0, %v501_v11  ;;  %v503_v20 = vmul.f32 %v2175_v58, %v471_v29  ;;  %v2177_v60 = vpop.eup %2176  ;;  %912 = vmatpush.msrb.mxu0 %v765_v15  ;;  %v757_v11 = vld [vmem:[#allocation11 + $0x108] sm:$0xff]  ;;  %v759_v29 = vld [vmem:[#allocation11 + $0x118] sm:$0xff] }
 0x159   :  { %v518_v23 = vsub.f32 2.0, %v502_v3  ;;  %v504_v44 = vmul.f32 %v2177_v60, %v472_v52  ;;  %v2179_v38 = vpop.eup %2178  ;;  %846 = vmatpush.msra.mxu3 %v767_v31  ;;  %v756_v3 = vld [vmem:[#allocation11 + $0x100] sm:$0xff]  ;;  %v738_v31 = vld [vmem:[#allocation11 + $0x70] sm:$0xff] }
 0x15a   :  { %v533_v14 = vmul.f32 %v2171_v46, %v517_v50  ;;  %v519_v59 = vsub.f32 2.0, %v503_v20  ;;  %v505_v37 = vmul.f32 %v2179_v38, %v473_v6  ;;  %v2181_v2 = vpop.eup %2180  ;;  %913 = vmatpush.msrb.mxu0 %v762_v19  ;;  %v727_v19 = vld [vmem:[#allocation11 + $0x18] sm:$0xff] }
 0x15b   :  { %v534_v45 = vmul.f32 %v2173_v51, %v518_v23  ;;  %v520_v36 = vsub.f32 2.0, %v504_v44  ;;  %v755_v51 = vld [vmem:[#allocation11 + $0xf8] sm:$0xff] }
 0x15c   :  { %v549_v28 = vmul.f32 %v533_v14, %v2780_v24  ;;  %v535_v61 = vmul.f32 %v2175_v58, %v519_v59  ;;  %v521_v35 = vsub.f32 2.0, %v505_v37  ;;  %914 = vmatpush.msrb.mxu0 %v759_v29  ;;  %v751_v23 = vld [vmem:[#allocation11 + $0xd8] sm:$0xff]  ;;  %v753_v58 = vld [vmem:[#allocation11 + $0xe8] sm:$0xff]  ;;  %v748_v59 = vld [vmem:[#allocation11 + $0xc0] sm:$0xff] }
 0x15d   :  { %v550_v41 = vmul.f32 %v534_v45, %v2824_v53  ;;  %v536_v40 = vmul.f32 %v2177_v60, %v520_v36  ;;  %v506_v53 = vmul.f32 %v2181_v2, %v474_v57  ;;  %v750_v60 = vld [vmem:[#allocation11 + $0xd0] sm:$0xff]  ;;  %v747_v36 = vld [vmem:[#allocation11 + $0xb8] sm:$0xff] }
 0x15e   :  { %v551_v24 = vmul.f32 %v535_v61, %v2852_v1  ;;  %v537_v9 = vmul.f32 %v2179_v38, %v521_v35  ;;  %915 = vmatpush.msrb.mxu0 %v756_v3  ;;  %v745_v61 = vld [vmem:[#allocation11 + $0xa8] sm:$0xff]  ;;  %v746_v57 = vld [vmem:[#allocation11 + $0xb0] sm:$0xff]  ;;  %v743_v35 = vld [vmem:[#allocation11 + $0x98] sm:$0xff] }
 0x15f   :  { %582 = vmatmul.f32.gmra.mxu1 %v548_v21  ;;  %v552_v22 = vmul.f32 %v536_v40, %v2819_v26  ;;  %v522_v48 = vsub.f32 2.0, %v506_v53  ;;  %v766_v26 = vld [vmem:[#allocation11 + $0x150] sm:$0xff]  ;;  %v1014_v53 = vld [vmem:[#allocation13 + $0x138] sm:$0xff]  ;;  %v725_v3 = vld [vmem:[#allocation11 + $0x8] sm:$0xff] }
 0x160   :  { %v553_v4 = vmul.f32 %v537_v9, %v2869_v8  ;;  %781 = vmatpush.msra.mxu2 %v766_v26  ;;  %v754_v21 = vld [vmem:[#allocation11 + $0xf0] sm:$0xff]  ;;  %916 = vmatpush.msrb.mxu0 %v753_v58  ;;  %v737_v26 = vld [vmem:[#allocation11 + $0x68] sm:$0xff] }
 0x161   :  { %v538_v42 = vmul.f32 %v2181_v2, %v522_v48  ;;  %v1017_v37 = vld [vmem:[#allocation13 + $0x150] sm:$0xff]  ;;  %v739_v48 = vld [vmem:[#allocation11 + $0x78] sm:$0xff] }
 0x162   :  { %782 = vmatpush.msra.mxu2 %v763_v39  ;;  %917 = vmatpush.msrb.mxu0 %v750_v60  ;;  %v742_v40 = vld [vmem:[#allocation11 + $0x90] sm:$0xff]  ;;  %v735_v39 = vld [vmem:[#allocation11 + $0x58] sm:$0xff] }
 0x163   :  { %v554_v47 = vmul.f32 %v538_v42, %v2881_v17  ;;  %v764_v17 = vld [vmem:[#allocation11 + $0x140] sm:$0xff]  ;;  %v741_v42 = vld [vmem:[#allocation11 + $0x88] sm:$0xff] }
 0x164   :  { %847 = vmatpush.msra.mxu3 %v764_v17  ;;  %783 = vmatpush.msra.mxu2 %v760_v25  ;;  %v1002_v25 = vld [vmem:[#allocation13 + $0xd8] sm:$0xff] }
 0x165   :  { %918 = vmatpush.msrb.mxu0 %v747_v36  ;;  %v981_v36 = vld [vmem:[#allocation13 + $0x30] sm:$0xff] }
 0x166   :  { %848 = vmatpush.msra.mxu3 %v761_v0  ;;  %784 = vmatpush.msra.mxu2 %v757_v11  ;;  %v729_v11 = vld [vmem:[#allocation11 + $0x28] sm:$0xff] }
 0x167   :  { %585 = vmatmul.f32.gmra.mxu1 %v549_v28  ;;  %v752_v28 = vld [vmem:[#allocation11 + $0xe0] sm:$0xff] }
 0x168   :  { %849 = vmatpush.msra.mxu3 %v758_v49  ;;  %785 = vmatpush.msra.mxu2 %v754_v21 }
 0x16a   :  { %850 = vmatpush.msra.mxu3 %v755_v51  ;;  %786 = vmatpush.msra.mxu2 %v751_v23  ;;  %v724_v51 = vld [vmem:[#allocation11] sm:$0xff] }
 0x16c   :  { %851 = vmatpush.msra.mxu3 %v752_v28  ;;  %787 = vmatpush.msra.mxu2 %v748_v59 }
 0x16e   :  { %788 = vmatpush.msra.mxu2 %v745_v61 }
 0x16f   :  { %588 = vmatmul.f32.gmra.mxu1 %v550_v41  ;;  %v749_v41 = vld [vmem:[#allocation11 + $0xc8] sm:$0xff] }
 0x170   :  { %852 = vmatpush.msra.mxu3 %v749_v41  ;;  %789 = vmatpush.msra.mxu2 %v742_v40  ;;  %v987_v41 = vld [vmem:[#allocation13 + $0x60] sm:$0xff] }
 0x172   :  { %853 = vmatpush.msra.mxu3 %v746_v57  ;;  %790 = vmatpush.msra.mxu2 %v739_v48 }
 0x174   :  { %854 = vmatpush.msra.mxu3 %v743_v35  ;;  %791 = vmatpush.msra.mxu2 %v736_v34  ;;  %v975_v35 = vld [vmem:[#allocation13] sm:$0xff] }
 0x177   :  { %591 = vmatmul.f32.gmra.mxu1 %v551_v24 }
 0x17f   :  { %594 = vmatmul.f32.gmra.mxu1 %v552_v22  ;;  %v744_v22 = vld [vmem:[#allocation11 + $0xa0] sm:$0xff] }
 0x180   :  { %919 = vmatpush.msrb.mxu0 %v744_v22 }
 0x182   :  { %920 = vmatpush.msrb.mxu0 %v741_v42 }
 0x184   :  { %921 = vmatpush.msrb.mxu0 %v738_v31 }
 0x186   :  { %922 = vmatpush.msrb.mxu0 %v735_v39 }
 0x187   :  { %597 = vmatmul.f32.gmra.mxu1 %v553_v4  ;;  %v740_v4 = vld [vmem:[#allocation11 + $0x80] sm:$0xff] }
 0x188   :  { %855 = vmatpush.msra.mxu3 %v740_v4 }
 0x18a   :  { %856 = vmatpush.msra.mxu3 %v737_v26 }
 0x18f   :  { %600 = vmatmul.f32.gmra.mxu1 %v554_v47 }
 0x1a2   :  { %v452_v1 = vpop.xlane.xlu2 %451 }
 0x1a3   :  { %v475_v5 = vmax.f32 %v452_v1, 1e-30 }
 0x1a5   :  { %2182 = vrcp.f32 %v475_v5 }
 0x1a9   :  { %v454_v30 = vpop.xlane.xlu1 %453 }
 0x1aa   :  { %v456_v8 = vpop.xlane.xlu2 %455  ;;  %v476_v62 = vmax.f32 %v454_v30, 1e-30  ;;  %v734_v30 = vld [vmem:[#allocation11 + $0x50] sm:$0xff] }
 0x1ab   :  { %v2183_v16 = vpop.eup %2182  ;;  %v477_v27 = vmax.f32 %v456_v8, 1e-30  ;;  %v733_v8 = vld [vmem:[#allocation11 + $0x48] sm:$0xff]  ;;  %857 = vmatpush.msra.mxu3 %v734_v30 }
 0x1ac   :  { %v507_v18 = vmul.f32 %v2183_v16, %v475_v5  ;;  %792 = vmatpush.msra.mxu2 %v733_v8  ;;  %v1021_v8 = vld [vmem:[#allocation13 + $0x170] sm:$0xff] }
 0x1ad   :  { %2184 = vrcp.f32 %v477_v27 }
 0x1ae   :  { %v523_v46 = vsub.f32 2.0, %v507_v18  ;;  %2186 = vrcp.f32 %v476_v62  ;;  %v732_v18 = vld [vmem:[#allocation11 + $0x40] sm:$0xff] }
 0x1af   :  { %923 = vmatpush.msrb.mxu0 %v732_v18 }
 0x1b0   :  { %v539_v50 = vmul.f32 %v2183_v16, %v523_v46  ;;  %v1005_v16 = vld [vmem:[#allocation13 + $0xf0] sm:$0xff]  ;;  %v728_v46 = vld [vmem:[#allocation11 + $0x20] sm:$0xff] }
 0x1b1   :  { %924 = vmatpush.msrb.mxu0 %v729_v11 }
 0x1b2   :  { %v3025_v14 = vpop.xlane.xlu0 %457  ;;  %v555_v52 = vmul.f32 %v539_v50, %v2931_v63  ;;  %v1020_v63 = vld [vmem:[#allocation13 + $0x168] sm:$0xff]  ;;  %v462_v17 = vpop.xlane.xlu2 %461  ;;  %v999_v50 = vld [vmem:[#allocation13 + $0xc0] sm:$0xff] }
 0x1b3   :  { %v3028_v20 = vpop.eup %2184  ;;  %v478_v45 = vmax.f32 %v3025_v14, 1e-30  ;;  %1031 = vmatpush.msrb.mxu1 %v1020_v63  ;;  %v480_v0 = vmax.f32 %v462_v17, 1e-30  ;;  %v726_v14 = vld [vmem:[#allocation11 + $0x10] sm:$0xff] }
 0x1b4   :  { %v2187_v6 = vpop.eup %2186  ;;  %603 = vmatmul.f32.gmra.mxu1 %v555_v52  ;;  %v509_v24 = vmul.f32 %v3028_v20, %v477_v27  ;;  %v730_v27 = vld [vmem:[#allocation11 + $0x30] sm:$0xff]  ;;  %v996_v52 = vld [vmem:[#allocation13 + $0xa8] sm:$0xff]  ;;  %925 = vmatpush.msrb.mxu0 %v726_v14 }
 0x1b5   :  { %v508_v44 = vmul.f32 %v2187_v6, %v476_v62  ;;  %2188 = vrcp.f32 %v478_v45  ;;  %1032 = vmatpush.msrb.mxu1 %v1017_v37  ;;  %v731_v62 = vld [vmem:[#allocation11 + $0x38] sm:$0xff]  ;;  %793 = vmatpush.msra.mxu2 %v730_v27 }
 0x1b6   :  { %v525_v47 = vsub.f32 2.0, %v509_v24  ;;  %858 = vmatpush.msra.mxu3 %v731_v62  ;;  %v978_v24 = vld [vmem:[#allocation13 + $0x18] sm:$0xff] }
 0x1b7   :  { %v524_v38 = vsub.f32 2.0, %v508_v44  ;;  %1033 = vmatpush.msrb.mxu1 %v1014_v53  ;;  %794 = vmatpush.msra.mxu2 %v727_v19  ;;  %v984_v44 = vld [vmem:[#allocation13 + $0x48] sm:$0xff]  ;;  %v1018_v62 = vld [vmem:[#allocation13 + $0x158] sm:$0xff] }
 0x1b8   :  { %v541_v15 = vmul.f32 %v3028_v20, %v525_v47  ;;  %859 = vmatpush.msra.mxu3 %v728_v46  ;;  %v990_v20 = vld [vmem:[#allocation13 + $0x78] sm:$0xff] }
 0x1b9   :  { %v540_v2 = vmul.f32 %v2187_v6, %v524_v38  ;;  %v3032_v9 = vpop.xlane.xlu1 %459  ;;  %1034 = vmatpush.msrb.mxu1 %v1011_v7  ;;  %795 = vmatpush.msra.mxu2 %v724_v51  ;;  %v3043_v46 = vld [vmem:[#allocation7] sm:$0xff] }
 0x1ba   :  { %v479_v1 = vmax.f32 %v3032_v9, 1e-30  ;;  %v557_v29 = vmul.f32 %v541_v15, %v2940_v10  ;;  %860 = vmatpush.msra.mxu3 %v725_v3  ;;  %v993_v10 = vld [vmem:[#allocation13 + $0x90] sm:$0xff] }
 0x1bb   :  { %v556_v5 = vmul.f32 %v540_v2, %v2946_v12  ;;  %v2189_v54 = vpop.eup %2188  ;;  %1035 = vmatpush.msrb.mxu1 %v1008_v43  ;;  %1096 = vmatpush.msrb.mxu2 %v1021_v8  ;;  %v1004_v8 = vld [vmem:[#allocation13 + $0xe8] sm:$0xff] }
 0x1bc   :  { %2190 = vrcp.f32 %v479_v1  ;;  %v510_v12 = vmul.f32 %v2189_v54, %v478_v45 }
 0x1bd   :  { %606 = vmatmul.f32.gmra.mxu1 %v556_v5  ;;  %2192 = vrcp.f32 %v480_v0  ;;  %1097 = vmatpush.msrb.mxu2 %v1018_v62  ;;  %v998_v62 = vld [vmem:[#allocation13 + $0xb8] sm:$0xff] }
 0x1be   :  { %1036 = vmatpush.msrb.mxu1 %v1005_v16  ;;  %v526_v49 = vsub.f32 2.0, %v510_v12 }
 0x1c0   :  { %1037 = vmatpush.msrb.mxu1 %v1002_v25  ;;  %v542_v58 = vmul.f32 %v2189_v54, %v526_v49  ;;  %v1015_v49 = vld [vmem:[#allocation13 + $0x140] sm:$0xff] }
 0x1c1   :  { %1098 = vmatpush.msrb.mxu2 %v1015_v49 }
 0x1c2   :  { %v2191_v21 = vpop.eup %2190  ;;  %1038 = vmatpush.msrb.mxu1 %v999_v50  ;;  %v464_v28 = vpop.xlane.xlu0 %463  ;;  %v558_v59 = vmul.f32 %v542_v58, %v2964_v55  ;;  %v1022_v50 = vld [vmem:[#allocation13 + $0x178] sm:$0xff] }
 0x1c3   :  { %v511_v23 = vmul.f32 %v2191_v21, %v479_v1  ;;  %v481_v45 = vmax.f32 %v464_v28, 1e-30  ;;  %v2193_v60 = vpop.eup %2192  ;;  %1161 = vmatpush.msrb.mxu3 %v1022_v50 }
 0x1c4   :  { %1039 = vmatpush.msrb.mxu1 %v996_v52  ;;  %v512_v63 = vmul.f32 %v2193_v60, %v480_v0  ;;  %v3046_v52 = vld [vmem:[#allocation7 + $0x8] sm:$0xff] }
 0x1c5   :  { %609 = vmatmul.f32.gmra.mxu1 %v557_v29  ;;  %v527_v6 = vsub.f32 2.0, %v511_v23  ;;  %2194 = vrcp.f32 %v481_v45 }
 0x1c6   :  { %1040 = vmatpush.msrb.mxu1 %v993_v10  ;;  %v528_v37 = vsub.f32 2.0, %v512_v63  ;;  %v1019_v10 = vld [vmem:[#allocation13 + $0x160] sm:$0xff]  ;;  %v1016_v63 = vld [vmem:[#allocation13 + $0x148] sm:$0xff] }
 0x1c7   :  { %v543_v57 = vmul.f32 %v2191_v21, %v527_v6  ;;  %v1012_v21 = vld [vmem:[#allocation13 + $0x128] sm:$0xff]  ;;  %1162 = vmatpush.msrb.mxu3 %v1019_v10 }
 0x1c8   :  { %1041 = vmatpush.msrb.mxu1 %v990_v20  ;;  %v544_v9 = vmul.f32 %v2193_v60, %v528_v37  ;;  %1099 = vmatpush.msrb.mxu2 %v1012_v21  ;;  %v1009_v20 = vld [vmem:[#allocation13 + $0x110] sm:$0xff] }
 0x1c9   :  { %v466_v61 = vpop.xlane.xlu1 %465  ;;  %v559_v40 = vmul.f32 %v543_v57, %v2981_v13  ;;  %1163 = vmatpush.msrb.mxu3 %v1016_v63  ;;  %v3052_v37 = vld [vmem:[#allocation7 + $0x18] sm:$0xff]  ;;  %v3073_v21 = vld [vmem:[#allocation7 + $0x50] sm:$0xff] }
 0x1ca   :  { %1042 = vmatpush.msrb.mxu1 %v987_v41  ;;  %v482_v38 = vmax.f32 %v466_v61, 1e-30  ;;  %v560_v42 = vmul.f32 %v544_v9, %v2958_v56  ;;  %1100 = vmatpush.msrb.mxu2 %v1009_v20  ;;  %v3049_v41 = vld [vmem:[#allocation7 + $0x10] sm:$0xff]  ;;  %v1006_v61 = vld [vmem:[#allocation13 + $0xf8] sm:$0xff] }
 0x1cb   :  { %v2195_v55 = vpop.eup %2194 }
 0x1cc   :  { %1043 = vmatpush.msrb.mxu1 %v984_v44  ;;  %2196 = vrcp.f32 %v482_v38  ;;  %v513_v2 = vmul.f32 %v2195_v55, %v481_v45  ;;  %1101 = vmatpush.msrb.mxu2 %v1006_v61  ;;  %v989_v61 = vld [vmem:[#allocation13 + $0x70] sm:$0xff] }
 0x1cd   :  { %612 = vmatmul.f32.gmra.mxu1 %v558_v59 }
 0x1ce   :  { %1044 = vmatpush.msrb.mxu1 %v981_v36  ;;  %v529_v4 = vsub.f32 2.0, %v513_v2 }
 0x1d0   :  { %1045 = vmatpush.msrb.mxu1 %v978_v24  ;;  %v545_v7 = vmul.f32 %v2195_v55, %v529_v4  ;;  %v1013_v55 = vld [vmem:[#allocation13 + $0x130] sm:$0xff]  ;;  %v3055_v4 = vld [vmem:[#allocation7 + $0x20] sm:$0xff] }
 0x1d1   :  { %1164 = vmatpush.msrb.mxu3 %v1013_v55 }
 0x1d2   :  { %1046 = vmatpush.msrb.mxu1 %v975_v35  ;;  %v2197_v47 = vpop.eup %2196  ;;  %v561_v43 = vmul.f32 %v545_v7, %v2994_v32  ;;  %v3058_v7 = vld [vmem:[#allocation7 + $0x28] sm:$0xff] }
 0x1d3   :  { %v514_v5 = vmul.f32 %v2197_v47, %v482_v38 }
 0x1d4   :  { %v580_v22 = vpop.f32.mrf.mxu1 }
 0x1d5   :  { %615 = vmatmul.f32.gmra.mxu1 %v559_v40  ;;  %v644_v53 = vmin.f32 %v580_v22, 0.0  ;;  %v530_v31 = vsub.f32 2.0, %v514_v5  ;;  %vm628_vm0 = vcmp.gt.f32.partialorder %v580_v22, 0.0  ;;  %v1000_v5 = vld [vmem:[#allocation13 + $0xc8] sm:$0xff] }
 0x1d7   :  { %v660_v48 = vmul.f32 1.442695, %v644_v53  ;;  %v546_v17 = vmul.f32 %v2197_v47, %v530_v31  ;;  %v997_v31 = vld [vmem:[#allocation13 + $0xb0] sm:$0xff] }
 0x1d9   :  { %2198 = vpow2.f32 %v660_v48  ;;  %v562_v27 = vmul.f32 %v546_v17, %v3008_v33 }
 0x1dc   :  { %v583_v1 = vpop.f32.mrf.mxu1 }
 0x1dd   :  { %618 = vmatmul.f32.gmra.mxu1 %v560_v42  ;;  %v645_v13 = vmin.f32 %v583_v1, 0.0  ;;  %vm629_vm1 = vcmp.gt.f32.partialorder %v583_v1, 0.0 }
 0x1df   :  { %v2199_v54 = vpop.eup %2198  ;;  %v662_v34 = vmul.f32 1.442695, %v645_v13 }
 0x1e0   :  { %v2032_v26 = vadd.f32 -1.0, %v2199_v54 }
 0x1e1   :  { %2200 = vpow2.f32 %v662_v34 }
 0x1e2   :  { %v708_v30 = vsel %vm628_vm0, %v580_v22, %v2032_v26  ;;  %v1003_v22 = vld [vmem:[#allocation13 + $0xe0] sm:$0xff] }
 0x1e3   :  { %796 = vmatmul.f32.vlgmr.msra.gmra.mxu2 %v708_v30  ;;  %861 = vmatmul.f32.vlgmr.msra.gmra.mxu3 %v708_v30  ;;  %v1007_v26 = vld [vmem:[#allocation13 + $0x100] sm:$0xff] }
 0x1e4   :  { %926 = vmatmul.f32.vlgmr.msrb.gmra.mxu0 %v708_v30  ;;  %v586_v56 = vpop.f32.mrf.mxu1  ;;  %1102 = vmatpush.msrb.mxu2 %v1003_v22  ;;  %v3064_v30 = vld [vmem:[#allocation7 + $0x38] sm:$0xff] }
 0x1e5   :  { %621 = vmatmul.f32.gmra.mxu1 %v561_v43  ;;  %v646_v39 = vmin.f32 %v586_v56, 0.0  ;;  %vm630_vm2 = vcmp.gt.f32.partialorder %v586_v56, 0.0  ;;  %v3061_v43 = vld [vmem:[#allocation7 + $0x30] sm:$0xff] }
 0x1e6   :  { %1103 = vmatpush.msrb.mxu2 %v1000_v5 }
 0x1e7   :  { %v2201_v12 = vpop.eup %2200  ;;  %v664_v15 = vmul.f32 1.442695, %v646_v39  ;;  %v1001_v39 = vld [vmem:[#allocation13 + $0xd0] sm:$0xff] }
 0x1e8   :  { %v2033_v16 = vadd.f32 -1.0, %v2201_v12  ;;  %1104 = vmatpush.msrb.mxu2 %v997_v31  ;;  %v977_v31 = vld [vmem:[#allocation13 + $0x10] sm:$0xff] }
 0x1e9   :  { %2202 = vpow2.f32 %v664_v15  ;;  %v3067_v15 = vld [vmem:[#allocation7 + $0x40] sm:$0xff] }
 0x1ea   :  { %v709_v32 = vsel %vm629_vm1, %v583_v1, %v2033_v16  ;;  %v1010_v1 = vld [vmem:[#allocation13 + $0x118] sm:$0xff]  ;;  %v991_v16 = vld [vmem:[#allocation13 + $0x80] sm:$0xff] }
 0x1eb   :  { %799 = vmatmul.f32.gmra.mxu2 %v709_v32  ;;  %864 = vmatmul.f32.gmra.mxu3 %v709_v32 }
 0x1ec   :  { %929 = vmatmul.f32.gmra.mxu0 %v709_v32  ;;  %v589_v18 = vpop.f32.mrf.mxu1  ;;  %1165 = vmatpush.msrb.mxu3 %v1010_v1 }
 0x1ed   :  { %624 = vmatmul.f32.gmra.mxu1 %v562_v27  ;;  %v647_v25 = vmin.f32 %v589_v18, 0.0  ;;  %vm631_vm3 = vcmp.gt.f32.partialorder %v589_v18, 0.0 }
 0x1ee   :  { %1166 = vmatpush.msrb.mxu3 %v1007_v26  ;;  %v976_v26 = vld [vmem:[#allocation13 + $0x8] sm:$0xff] }
 0x1ef   :  { %v2203_v0 = vpop.eup %2202  ;;  %v666_v19 = vmul.f32 1.442695, %v647_v25  ;;  %v988_v25 = vld [vmem:[#allocation13 + $0x68] sm:$0xff] }
 0x1f0   :  { %v2034_v11 = vadd.f32 -1.0, %v2203_v0  ;;  %1167 = vmatpush.msrb.mxu3 %v1004_v8 }
 0x1f1   :  { %2204 = vpow2.f32 %v666_v19 }
 0x1f2   :  { %v710_v29 = vsel %vm630_vm2, %v586_v56, %v2034_v11  ;;  %v994_v56 = vld [vmem:[#allocation13 + $0x98] sm:$0xff]  ;;  %1168 = vmatpush.msrb.mxu3 %v1001_v39 }
 0x1f3   :  { %802 = vmatmul.f32.gmra.mxu2 %v710_v29  ;;  %867 = vmatmul.f32.gmra.mxu3 %v710_v29 }
 0x1f4   :  { %932 = vmatmul.f32.gmra.mxu0 %v710_v29  ;;  %v592_v33 = vpop.f32.mrf.mxu1  ;;  %1105 = vmatpush.msrb.mxu2 %v994_v56  ;;  %v3085_v56 = vld [vmem:[#allocation7 + $0x70] sm:$0xff] }
 0x1f5   :  { %1047 = vmatmul.f32.vlgmr.msrb.gmra.mxu1 %v3043_v46  ;;  %v648_v51 = vmin.f32 %v592_v33, 0.0  ;;  %vm632_vm4 = vcmp.gt.f32.partialorder %v592_v33, 0.0  ;;  %1169 = vmatpush.msrb.mxu3 %v998_v62 }
 0x1f6   :  { %1106 = vmatpush.msrb.mxu2 %v991_v16 }
 0x1f7   :  { %v2205_v3 = vpop.eup %2204  ;;  %v668_v14 = vmul.f32 1.442695, %v648_v51  ;;  %v985_v51 = vld [vmem:[#allocation13 + $0x50] sm:$0xff] }
 0x1f8   :  { %v2035_v23 = vadd.f32 -1.0, %v2205_v3  ;;  %1107 = vmatpush.msrb.mxu2 %v988_v25 }
 0x1f9   :  { %2206 = vpow2.f32 %v668_v14 }
 0x1fa   :  { %v711_v28 = vsel %vm631_vm3, %v589_v18, %v2035_v23  ;;  %v3070_v18 = vld [vmem:[#allocation7 + $0x48] sm:$0xff]  ;;  %1108 = vmatpush.msrb.mxu2 %v985_v51 }
 0x1fb   :  { %805 = vmatmul.f32.gmra.mxu2 %v711_v28  ;;  %870 = vmatmul.f32.gmra.mxu3 %v711_v28 }
 0x1fc   :  { %935 = vmatmul.f32.gmra.mxu0 %v711_v28  ;;  %v595_v58 = vpop.f32.mrf.mxu1 }
 0x1fd   :  { %1050 = vmatmul.f32.gmra.mxu1 %v3046_v52  ;;  %v649_v45 = vmin.f32 %v595_v58, 0.0  ;;  %vm633_vm5 = vcmp.gt.f32.partialorder %v595_v58, 0.0 }
 0x1ff   :  { %v2207_v6 = vpop.eup %2206  ;;  %v670_v59 = vmul.f32 1.442695, %v649_v45  ;;  %v3076_v45 = vld [vmem:[#allocation7 + $0x58] sm:$0xff] }
 0x200   :  { %v2036_v60 = vadd.f32 -1.0, %v2207_v6  ;;  %v982_v6 = vld [vmem:[#allocation13 + $0x38] sm:$0xff] }
 0x201   :  { %2208 = vpow2.f32 %v670_v59  ;;  %1109 = vmatpush.msrb.mxu2 %v982_v6 }
 0x202   :  { %v712_v44 = vsel %vm632_vm4, %v592_v33, %v2036_v60  ;;  %v995_v33 = vld [vmem:[#allocation13 + $0xa0] sm:$0xff] }
 0x203   :  { %808 = vmatmul.f32.gmra.mxu2 %v712_v44  ;;  %873 = vmatmul.f32.gmra.mxu3 %v712_v44 }
 0x204   :  { %938 = vmatmul.f32.gmra.mxu0 %v712_v44  ;;  %v598_v57 = vpop.f32.mrf.mxu1  ;;  %1170 = vmatpush.msrb.mxu3 %v995_v33 }
 0x205   :  { %1053 = vmatmul.f32.gmra.mxu1 %v3049_v41  ;;  %v650_v36 = vmin.f32 %v598_v57, 0.0  ;;  %vm634_vm6 = vcmp.gt.f32.partialorder %v598_v57, 0.0 }
 0x207   :  { %v2209_v24 = vpop.eup %2208  ;;  %v672_v38 = vmul.f32 1.442695, %v650_v36 }
 0x208   :  { %v2037_v40 = vadd.f32 -1.0, %v2209_v24  ;;  %v3079_v24 = vld [vmem:[#allocation7 + $0x60] sm:$0xff] }
 0x209   :  { %2210 = vpow2.f32 %v672_v38  ;;  %v979_v38 = vld [vmem:[#allocation13 + $0x20] sm:$0xff] }
 0x20a   :  { %v713_v35 = vsel %vm633_vm5, %v595_v58, %v2037_v40  ;;  %v992_v58 = vld [vmem:[#allocation13 + $0x88] sm:$0xff]  ;;  %1110 = vmatpush.msrb.mxu2 %v979_v38 }
 0x20b   :  { %811 = vmatmul.f32.gmra.mxu2 %v713_v35  ;;  %876 = vmatmul.f32.gmra.mxu3 %v713_v35 }
 0x20c   :  { %941 = vmatmul.f32.gmra.mxu0 %v713_v35  ;;  %v601_v2 = vpop.f32.mrf.mxu1  ;;  %1171 = vmatpush.msrb.mxu3 %v992_v58 }
 0x20d   :  { %1056 = vmatmul.f32.gmra.mxu1 %v3052_v37  ;;  %v651_v53 = vmin.f32 %v601_v2, 0.0  ;;  %vm635_vm7 = vcmp.gt.f32.partialorder %v601_v2, 0.0  ;;  %1111 = vmatpush.msrb.mxu2 %v976_v26 }
 0x20e   :  { %1172 = vmatpush.msrb.mxu3 %v989_v61 }
 0x20f   :  { %v2211_v9 = vpop.eup %2210  ;;  %v674_v48 = vmul.f32 1.442695, %v651_v53 }
 0x210   :  { %v2038_v42 = vadd.f32 -1.0, %v2211_v9  ;;  %v3082_v9 = vld [vmem:[#allocation7 + $0x68] sm:$0xff] }
 0x211   :  { %2212 = vpow2.f32 %v674_v48  ;;  %v986_v48 = vld [vmem:[#allocation13 + $0x58] sm:$0xff] }
 0x212   :  { %v714_v47 = vsel %vm634_vm6, %v598_v57, %v2038_v42  ;;  %1173 = vmatpush.msrb.mxu3 %v986_v48 }
 0x213   :  { %814 = vmatmul.f32.gmra.mxu2 %v714_v47  ;;  %879 = vmatmul.f32.gmra.mxu3 %v714_v47 }
 0x214   :  { %944 = vmatmul.f32.gmra.mxu0 %v714_v47  ;;  %v983_v47 = vld [vmem:[#allocation13 + $0x40] sm:$0xff] }
 0x215   :  { %1059 = vmatmul.f32.gmra.mxu1 %v3055_v4  ;;  %1174 = vmatpush.msrb.mxu3 %v983_v47 }
 0x217   :  { %v2213_v13 = vpop.eup %2212 }
 0x218   :  { %v2039_v54 = vadd.f32 -1.0, %v2213_v13 }
 0x21a   :  { %v715_v34 = vsel %vm635_vm7, %v601_v2, %v2039_v54  ;;  %v980_v54 = vld [vmem:[#allocation13 + $0x28] sm:$0xff] }
 0x21b   :  { %817 = vmatmul.f32.gmra.mxu2 %v715_v34  ;;  %882 = vmatmul.f32.gmra.mxu3 %v715_v34 }
 0x21c   :  { %947 = vmatmul.f32.gmra.mxu0 %v715_v34  ;;  %1175 = vmatpush.msrb.mxu3 %v980_v54 }
 0x21d   :  { %1062 = vmatmul.f32.gmra.mxu1 %v3058_v7 }
 0x21e   :  { %1176 = vmatpush.msrb.mxu3 %v977_v31 }
 0x225   :  { %1065 = vmatmul.f32.gmra.mxu1 %v3061_v43 }
 0x22d   :  { %1068 = vmatmul.f32.gmra.mxu1 %v3064_v30 }
 0x231   :  { %v604_v17 = vpop.f32.mrf.mxu1 }
 0x232   :  { %v652_v12 = vmin.f32 %v604_v17, 0.0  ;;  %vm636_vm8 = vcmp.gt.f32.partialorder %v604_v17, 0.0 }
 0x234   :  { %v676_v27 = vmul.f32 1.442695, %v652_v12 }
 0x235   :  { %1071 = vmatmul.f32.gmra.mxu1 %v3067_v15 }
 0x236   :  { %2214 = vpow2.f32 %v676_v27 }
 0x23a   :  { %v607_v32 = vpop.f32.mrf.mxu1 }
 0x23b   :  { %v653_v0 = vmin.f32 %v607_v32, 0.0  ;;  %vm637_vm9 = vcmp.gt.f32.partialorder %v607_v32, 0.0 }
 0x23c   :  { %v2215_v19 = vpop.eup %2214 }
 0x23d   :  { %v678_v11 = vmul.f32 1.442695, %v653_v0  ;;  %v2040_v49 = vadd.f32 -1.0, %v2215_v19  ;;  %1074 = vmatmul.f32.gmra.mxu1 %v3070_v18 }
 0x23f   :  { %2216 = vpow2.f32 %v678_v11  ;;  %v716_v29 = vsel %vm636_vm8, %v604_v17, %v2040_v49 }
 0x240   :  { %820 = vmatmul.f32.gmra.mxu2 %v716_v29  ;;  %885 = vmatmul.f32.gmra.mxu3 %v716_v29 }
 0x241   :  { %950 = vmatmul.f32.gmra.mxu0 %v716_v29 }
 0x242   :  { %v610_v50 = vpop.f32.mrf.mxu1 }
 0x243   :  { %v654_v3 = vmin.f32 %v610_v50, 0.0  ;;  %vm638_vm10 = vcmp.gt.f32.partialorder %v610_v50, 0.0 }
 0x245   :  { %v2217_v14 = vpop.eup %2216  ;;  %v680_v23 = vmul.f32 1.442695, %v654_v3  ;;  %1077 = vmatmul.f32.gmra.mxu1 %v3073_v21 }
 0x246   :  { %v2041_v28 = vadd.f32 -1.0, %v2217_v14 }
 0x247   :  { %2218 = vpow2.f32 %v680_v23 }
 0x248   :  { %v717_v10 = vsel %vm637_vm9, %v607_v32, %v2041_v28  ;;  %v3088_v32 = vld [vmem:[#allocation7 + $0x78] sm:$0xff] }
 0x249   :  { %823 = vmatmul.f32.gmra.mxu2 %v717_v10  ;;  %888 = vmatmul.f32.gmra.mxu3 %v717_v10 }
 0x24a   :  { %953 = vmatmul.f32.gmra.mxu0 %v717_v10  ;;  %v613_v20 = vpop.f32.mrf.mxu1 }
 0x24b   :  { %v655_v59 = vmin.f32 %v613_v20, 0.0  ;;  %vm639_vm11 = vcmp.gt.f32.partialorder %v613_v20, 0.0 }
 0x24d   :  { %v2219_v60 = vpop.eup %2218  ;;  %v682_v44 = vmul.f32 1.442695, %v655_v59  ;;  %1080 = vmatmul.f32.gmra.mxu1 %v3076_v45 }
 0x24e   :  { %v2042_v63 = vadd.f32 -1.0, %v2219_v60 }
 0x24f   :  { %2220 = vpow2.f32 %v682_v44 }
 0x250   :  { %v718_v57 = vsel %vm638_vm10, %v610_v50, %v2042_v63 }
 0x251   :  { %826 = vmatmul.f32.gmra.mxu2 %v718_v57  ;;  %891 = vmatmul.f32.gmra.mxu3 %v718_v57 }
 0x252   :  { %956 = vmatmul.f32.gmra.mxu0 %v718_v57  ;;  %v616_v36 = vpop.f32.mrf.mxu1 }
 0x253   :  { %v656_v40 = vmin.f32 %v616_v36, 0.0  ;;  %vm640_vm12 = vcmp.gt.f32.partialorder %v616_v36, 0.0 }
 0x255   :  { %v2221_v35 = vpop.eup %2220  ;;  %v684_v55 = vmul.f32 1.442695, %v656_v40  ;;  %1083 = vmatmul.f32.gmra.mxu1 %v3079_v24 }
 0x256   :  { %v2043_v22 = vadd.f32 -1.0, %v2221_v35 }
 0x257   :  { %2222 = vpow2.f32 %v684_v55 }
 0x258   :  { %v719_v2 = vsel %vm639_vm11, %v613_v20, %v2043_v22 }
 0x259   :  { %829 = vmatmul.f32.gmra.mxu2 %v719_v2  ;;  %894 = vmatmul.f32.gmra.mxu3 %v719_v2 }
 0x25a   :  { %959 = vmatmul.f32.gmra.mxu0 %v719_v2  ;;  %v619_v53 = vpop.f32.mrf.mxu1 }
 0x25b   :  { %v657_v42 = vmin.f32 %v619_v53, 0.0  ;;  %vm641_vm13 = vcmp.gt.f32.partialorder %v619_v53, 0.0 }
 0x25d   :  { %v2223_v1 = vpop.eup %2222  ;;  %v686_v5 = vmul.f32 1.442695, %v657_v42  ;;  %1086 = vmatmul.f32.gmra.mxu1 %v3082_v9 }
 0x25e   :  { %v2044_v13 = vadd.f32 -1.0, %v2223_v1 }
 0x25f   :  { %2224 = vpow2.f32 %v686_v5 }
 0x260   :  { %v720_v34 = vsel %vm640_vm12, %v616_v36, %v2044_v13 }
 0x261   :  { %832 = vmatmul.f32.gmra.mxu2 %v720_v34  ;;  %897 = vmatmul.f32.gmra.mxu3 %v720_v34 }
 0x262   :  { %962 = vmatmul.f32.gmra.mxu0 %v720_v34  ;;  %v622_v8 = vpop.f32.mrf.mxu1 }
 0x263   :  { %v658_v39 = vmin.f32 %v622_v8, 0.0  ;;  %vm642_vm14 = vcmp.gt.f32.partialorder %v622_v8, 0.0 }
 0x265   :  { %v2225_v17 = vpop.eup %2224  ;;  %v688_v12 = vmul.f32 1.442695, %v658_v39  ;;  %1089 = vmatmul.f32.gmra.mxu1 %v3085_v56 }
 0x266   :  { %v2045_v16 = vadd.f32 -1.0, %v2225_v17  ;;  %v797_v33 = vpop.f32.mrf.mxu2  ;;  %v3091_v50 = vpop.f32.mrf.mxu3 }
 0x267   :  { %2226 = vpow2.f32 %v688_v12 }
 0x268   :  { %v721_v27 = vsel %vm641_vm13, %v619_v53, %v2045_v16 }
 0x269   :  { %835 = vmatmul.f32.gmra.mxu2 %v721_v27  ;;  %900 = vmatmul.f32.gmra.mxu3 %v721_v27 }
 0x26a   :  { %965 = vmatmul.f32.gmra.mxu0 %v721_v27  ;;  %v625_v62 = vpop.f32.mrf.mxu1 }
 0x26b   :  { %v659_v25 = vmin.f32 %v625_v62, 0.0  ;;  %vm643_vm15 = vcmp.gt.f32.partialorder %v625_v62, 0.0 }
 0x26d   :  { %v2227_v0 = vpop.eup %2226  ;;  %v690_v19 = vmul.f32 1.442695, %v659_v25  ;;  %1092 = vmatmul.f32.gmra.mxu1 %v3088_v32 }
 0x26e   :  { %v2046_v11 = vadd.f32 -1.0, %v2227_v0  ;;  %v800_v14 = vpop.f32.mrf.mxu2  ;;  %v3093_v23 = vpop.f32.mrf.mxu3 }
 0x26f   :  { %2228 = vpow2.f32 %v690_v19 }
 0x270   :  { %v722_v49 = vsel %vm642_vm14, %v622_v8, %v2046_v11 }
 0x271   :  { %838 = vmatmul.f32.gmra.mxu2 %v722_v49  ;;  %903 = vmatmul.f32.gmra.mxu3 %v722_v49 }
 0x272   :  { %968 = vmatmul.f32.gmra.mxu0 %v722_v49  ;;  %v1048_v10 = vpop.f32.mrf.mxu1 }
 0x275   :  { %v2229_v29 = vpop.eup %2228 }
 0x276   :  { %v2047_v51 = vadd.f32 -1.0, %v2229_v29  ;;  %v803_v28 = vpop.f32.mrf.mxu2  ;;  %v3097_v58 = vpop.f32.mrf.mxu3 }
 0x278   :  { %v723_v3 = vsel %vm643_vm15, %v625_v62, %v2047_v51 }
 0x279   :  { %841 = vmatmul.f32.gmra.mxu2 %v723_v3  ;;  %906 = vmatmul.f32.gmra.mxu3 %v723_v3 }
 0x27a   :  { %971 = vmatmul.f32.gmra.mxu0 %v723_v3  ;;  %v1051_v59 = vpop.f32.mrf.mxu1 }
 0x27e   :  { %v806_v20 = vpop.f32.mrf.mxu2  ;;  %v3103_v6 = vpop.f32.mrf.mxu3 }
 0x281   :  { %1112 = vmatmul.f32.vlgmr.msrb.gmra.mxu2 %v3043_v46  ;;  %1177 = vmatmul.f32.vlgmr.msrb.gmra.mxu3 %v3043_v46  ;;  %v3107_v46 = vpop.f32.mrf.mxu0 }
 0x282   :  { %v1054_v63 = vpop.f32.mrf.mxu1 }
 0x286   :  { %v809_v60 = vpop.f32.mrf.mxu2  ;;  %v3109_v44 = vpop.f32.mrf.mxu3 }
 0x289   :  { %1115 = vmatmul.f32.gmra.mxu2 %v3046_v52  ;;  %1180 = vmatmul.f32.gmra.mxu3 %v3046_v52  ;;  %v3113_v52 = vpop.f32.mrf.mxu0 }
 0x28a   :  { %v1057_v57 = vpop.f32.mrf.mxu1 }
 0x28e   :  { %v3117_v61 = vpop.f32.mrf.mxu3 }
 0x291   :  { %1118 = vmatmul.f32.gmra.mxu2 %v3049_v41  ;;  %1183 = vmatmul.f32.gmra.mxu3 %v3049_v41  ;;  %v3115_v41 = vpop.f32.mrf.mxu2 }
 0x296   :  { %v3125_v38 = vpop.f32.mrf.mxu3 }
 0x299   :  { %1121 = vmatmul.f32.gmra.mxu2 %v3052_v37  ;;  %1186 = vmatmul.f32.gmra.mxu3 %v3052_v37  ;;  %v3121_v37 = vpop.f32.mrf.mxu0  ;;  %v3123_v36 = vpop.f32.mrf.mxu2 }
 0x29e   :  { %v3140_v55 = vpop.f32.mrf.mxu3 }
 0x2a1   :  { %1124 = vmatmul.f32.gmra.mxu2 %v3055_v4  ;;  %1189 = vmatmul.f32.gmra.mxu3 %v3055_v4  ;;  %v1060_v4 = vpop.f32.mrf.mxu1  ;;  %v3129_v40 = vpop.f32.mrf.mxu0 }
 0x2a2   :  { %v3138_v35 = vpop.f32.mrf.mxu2 }
 0x2a9   :  { %1127 = vmatmul.f32.gmra.mxu2 %v3058_v7  ;;  %1192 = vmatmul.f32.gmra.mxu3 %v3058_v7  ;;  %v3136_v7 = vld [vmem:[%s4176_s8] sm:$0x7]  ;;  %v1063_v22 = vpop.f32.mrf.mxu1  ;;  %v3156_v48 = vpop.f32.mrf.mxu0 }
 0x2aa   :  { %v3143_v2 = vperm.slane %v3136_v7, 0 }
 0x2ac   :  { %v1049_v53 = vadd.f32 %v1048_v10, %v3143_v2  ;;  %v1052_v13 = vadd.f32 %v1051_v59, %v3143_v2  ;;  %v1055_v31 = vadd.f32 %v1054_v63, %v3143_v2  ;;  %v1058_v27 = vadd.f32 %v1057_v57, %v3143_v2 }
 0x2ad   :  { %v1061_v49 = vadd.f32 %v1060_v4, %v3143_v2 }
 0x2b1   :  { %1130 = vmatmul.f32.gmra.mxu2 %v3061_v43  ;;  %1195 = vmatmul.f32.gmra.mxu3 %v3061_v43  ;;  %v3148_v43 = vld [vmem:[%s4174_s6] sm:$0x7]  ;;  %v1066_v54 = vpop.f32.mrf.mxu1  ;;  %v3172_v17 = vpop.f32.mrf.mxu0  ;;  %s2621_s6 = smov [#allocation14]  }
 0x2b2   :  { %s2014_s8 = sshll.u32 %s2621_s6, 4  ;;  %s2015_s8 = int_to_ptr.vmem [resolvable:$true] %s2014_s8 }
 0x2b9   :  { %1133 = vmatmul.f32.gmra.mxu2 %v3064_v30  ;;  %1198 = vmatmul.f32.gmra.mxu3 %v3064_v30  ;;  %v3151_v30 = vperm.slane %v3148_v43, 0 }
 0x2bb   :  { %v798_v1 = vadd.f32 %v797_v33, %v3151_v30  ;;  %v801_v34 = vadd.f32 %v800_v14, %v3151_v30  ;;  %v804_v12 = vadd.f32 %v803_v28, %v3151_v30  ;;  %v807_v62 = vadd.f32 %v806_v20, %v3151_v30  ;;  %v3187_v28 = vpop.f32.mrf.mxu0 }
 0x2bc   :  { %v810_v51 = vadd.f32 %v809_v60, %v3151_v30  ;;  %v1064_v20 = vadd.f32 %v1063_v22, %v3143_v2  ;;  %v813_v63 = vadd.f32 %v3115_v41, %v3151_v30  ;;  %v1067_v60 = vadd.f32 %v1066_v54, %v3143_v2 }
 0x2bd   :  { %v1226_v5 = vadd.f32 %v1049_v53, %v798_v1  ;;  %v1227_v26 = vadd.f32 %v1052_v13, %v801_v34  ;;  %v1228_v25 = vadd.f32 %v1055_v31, %v804_v12  ;;  %v1229_v0 = vadd.f32 %v1058_v27, %v807_v62 }
 0x2be   :  { %v816_v53 = vadd.f32 %v3123_v36, %v3151_v30  ;;  %v1231_v22 = vadd.f32 %v1064_v20, %v813_v63  ;;  %v819_v41 = vadd.f32 %v3138_v35, %v3151_v30 }
 0x2bf   :  { %v2049_v16 = vmul.f32 -1.442695, %v1227_v26  ;;  %v2050_v11 = vmul.f32 -1.442695, %v1228_v25  ;;  %v2051_v3 = vmul.f32 -1.442695, %v1229_v0 }
 0x2c0   :  { %v1232_v54 = vadd.f32 %v1067_v60, %v816_v53 }
 0x2c1   :  { %1136 = vmatmul.f32.gmra.mxu2 %v3067_v15  ;;  %1201 = vmatmul.f32.gmra.mxu3 %v3067_v15  ;;  %v2048_v15 = vmul.f32 -1.442695, %v1226_v5 }
 0x2c3   :  { %v3158_v42 = vpop.f32.mrf.mxu2  ;;  %v3160_v47 = vpop.f32.mrf.mxu3  ;;  %2230 = vpow2.f32 %v2048_v15  ;;  %v2053_v15 = vmul.f32 -1.442695, %v1231_v22 }
 0x2c4   :  { %2232 = vpow2.f32 %v2049_v16  ;;  %v3212_v12 = vpop.f32.mrf.mxu0  ;;  %v2054_v16 = vmul.f32 -1.442695, %v1232_v54 }
 0x2c5   :  { %2234 = vpow2.f32 %v2050_v11 }
 0x2c6   :  { %2236 = vpow2.f32 %v2051_v3  ;;  %v3235_v3 = vperm.slane %v3148_v43, 1 }
 0x2c8   :  { %v3253_v53 = vadd.f32 %v3091_v50, %v3235_v3 }
 0x2c9   :  { %1139 = vmatmul.f32.gmra.mxu2 %v3070_v18  ;;  %1204 = vmatmul.f32.gmra.mxu3 %v3070_v18  ;;  %v1069_v18 = vpop.f32.mrf.mxu1  ;;  %v2231_v19 = vpop.eup %2230 }
 0x2ca   :  { %v3185_v14 = vadd.f32 1.0, %v2231_v19  ;;  %v2233_v10 = vpop.eup %2232  ;;  %v1070_v1 = vadd.f32 %v1069_v18, %v3143_v2 }
 0x2cb   :  { %v3196_v57 = vadd.f32 1.0, %v2233_v10  ;;  %v2235_v13 = vpop.eup %2234 }
 0x2cc   :  { %v3168_v8 = vpop.f32.mrf.mxu2  ;;  %v3170_v39 = vpop.f32.mrf.mxu3  ;;  %2238 = vrcp.f32 %v3185_v14  ;;  %v1233_v26 = vadd.f32 %v1070_v1, %v819_v41  ;;  %v3210_v36 = vadd.f32 1.0, %v2235_v13  ;;  %vm1311_vm1 = vweird.f32 %v3185_v14 }
 0x2cd   :  { %2240 = vrcp.f32 %v3196_v57  ;;  %v2237_v34 = vpop.eup %2236  ;;  %v3241_v63 = vpop.f32.mrf.mxu0  ;;  %vm1326_vm5 = vweird.f32 %v3196_v57 }
 0x2ce   :  { %v3216_v27 = vadd.f32 1.0, %v2237_v34  ;;  %v2055_v62 = vmul.f32 -1.442695, %v1233_v26  ;;  %vm1341_vm8 = vweird.f32 %v3210_v36 }
 0x2d0   :  { %vm1356_vm11 = vweird.f32 %v3216_v27 }
 0x2d1   :  { %1142 = vmatmul.f32.gmra.mxu2 %v3073_v21  ;;  %1207 = vmatmul.f32.gmra.mxu3 %v3073_v21  ;;  %v1230_v21 = vadd.f32 %v1061_v49, %v810_v51  ;;  %v1072_v59 = vpop.f32.mrf.mxu1  ;;  %v3231_v51 = vperm.slane %v3148_v43, 2 }
 0x2d2   :  { %v3208_v31 = vpop.eup %2238  ;;  %v1073_v49 = vadd.f32 %v1072_v59, %v3143_v2 }
 0x2d3   :  { %v2052_v4 = vmul.f32 -1.442695, %v1230_v21  ;;  %v1307_v0 = vmul.f32 %v3208_v31, %v3185_v14  ;;  %v3224_v19 = vpop.eup %2240  ;;  %v3249_v43 = vadd.f32 %v3107_v46, %v3231_v51  ;;  %v3264_v54 = vadd.f32 %v3113_v52, %v3231_v51 }
 0x2d4   :  { %v3180_v29 = vpop.f32.mrf.mxu2  ;;  %v3182_v33 = vpop.f32.mrf.mxu3  ;;  %v1322_v21 = vmul.f32 %v3224_v19, %v3196_v57  ;;  %v3268_v46 = vadd.f32 %v3093_v23, %v3235_v3  ;;  %v3277_v26 = vadd.f32 %v3121_v37, %v3231_v51  ;;  %v3285_v52 = vadd.f32 %v3129_v40, %v3231_v51 }
 0x2d5   :  { %2242 = vpow2.f32 %v2052_v4  ;;  %v1308_v10 = vsub.f32 1.0, %v1307_v0  ;;  %v1315_v0 = vand.u32 2147483647, %v3185_v14  ;;  %vm1312_vm0 = vweird.f32 %v3208_v31 }
 0x2d6   :  { %2244 = vpow2.f32 %v2053_v15  ;;  %4211 = vst [vmem:[#allocation21_spill] sm:$0xff] %v3285_v52  ;;  %vm3322_vm2 = vmor %vm1311_vm1, %vm1312_vm0  ;;  %vm1327_vm4 = vweird.f32 %v3224_v19 }
 0x2d7   :  { %2246 = vrcp.f32 %v3210_v36  ;;  %v1309_v13 = vmul.f32 %v3208_v31, %v1308_v10  ;;  %v825_v10 = vadd.f32 %v3168_v8, %v3151_v30  ;;  %v3318_v8 = vpop.f32.mrf.mxu0  ;;  %vm3326_vm3 = vcmp.eq.f32.partialorder %v1315_v0, 8.507059e+37  ;;  %vm3374_vm7 = vmor %vm1326_vm5, %vm1327_vm4 }
 0x2d8   :  { %2248 = vpow2.f32 %v2054_v16  ;;  %v3281_v16 = vadd.f32 %v3097_v58, %v3235_v3 }
 0x2d9   :  { %1145 = vmatmul.f32.gmra.mxu2 %v3076_v45  ;;  %1210 = vmatmul.f32.gmra.mxu3 %v3076_v45  ;;  %v1075_v35 = vpop.f32.mrf.mxu1  ;;  %2250 = vrcp.f32 %v3216_v27  ;;  %v1310_v37 = vadd.f32 %v3208_v31, %v1309_v13 }
 0x2da   :  { %2252 = vpow2.f32 %v2055_v62 }
 0x2db   :  { %v2243_v11 = vpop.eup %2242 }
 0x2dc   :  { %v3201_v5 = vpop.f32.mrf.mxu2  ;;  %v3203_v45 = vpop.f32.mrf.mxu3  ;;  %v3239_v20 = vadd.f32 1.0, %v2243_v11  ;;  %v1317_v11 = vand.u32 2147483648, %v3185_v14 }
 0x2de   :  { %2254 = vrcp.f32 %v3239_v20  ;;  %vm1371_vm1 = vweird.f32 %v3239_v20 }
 0x2e1   :  { %1148 = vmatmul.f32.gmra.mxu2 %v3079_v24  ;;  %1213 = vmatmul.f32.gmra.mxu3 %v3079_v24  ;;  %v822_v24 = vadd.f32 %v3158_v42, %v3151_v30  ;;  %v2245_v42 = vpop.eup %2244  ;;  %v3273_v34 = vpop.f32.mrf.mxu1 }
 0x2e2   :  { %v3245_v60 = vpop.eup %2246  ;;  %v3271_v50 = vadd.f32 1.0, %v2245_v42  ;;  %v3308_v42 = vadd.f32 %v3103_v6, %v3235_v3 }
 0x2e3   :  { %v1234_v59 = vadd.f32 %v1073_v49, %v822_v24  ;;  %v2249_v4 = vpop.eup %2248  ;;  %v1337_v24 = vmul.f32 %v3245_v60, %v3210_v36  ;;  %vm1342_vm10 = vweird.f32 %v3245_v60 }
 0x2e4   :  { %v3218_v25 = vpop.f32.mrf.mxu2  ;;  %v3220_v18 = vpop.f32.mrf.mxu3  ;;  %v3287_v62 = vadd.f32 1.0, %v2249_v4  ;;  %2256 = vrcp.f32 %v3271_v50  ;;  %vm3430_vm13 = vmor %vm1341_vm8, %vm1342_vm10  ;;  %vm1386_vm4 = vweird.f32 %v3271_v50 }
 0x2e5   :  { %v3260_v41 = vpop.eup %2250  ;;  %v2056_v23 = vmul.f32 -1.442695, %v1234_v59  ;;  %v3312_v59 = vadd.f32 %v3156_v48, %v3231_v51  ;;  %v1330_v48 = vand.u32 2147483647, %v3196_v57 }
 0x2e6   :  { %v2253_v15 = vpop.eup %2252  ;;  %v1352_v40 = vmul.f32 %v3260_v41, %v3216_v27  ;;  %vm1357_vm12 = vweird.f32 %v3260_v41  ;;  %vm1401_vm8 = vweird.f32 %v3287_v62 }
 0x2e7   :  { %v3299_v49 = vadd.f32 1.0, %v2253_v15  ;;  %4212 = vst [vmem:[#allocation22_spill] sm:$0xff] %v3312_v59  ;;  %2258 = vpow2.f32 %v2056_v23  ;;  %v3315_v4 = vpop.eup %2254  ;;  %v1318_v15 = vor.u32 1.1754944e-38, %v1317_v11  ;;  %v1332_v23 = vand.u32 2147483648, %v3196_v57  ;;  %vm3452_vm15 = vmor %vm1356_vm11, %vm1357_vm12 }
 0x2e8   :  { %2260 = vrcp.f32 %v3287_v62  ;;  %v1353_v52 = vsub.f32 1.0, %v1352_v40  ;;  %vm3359_vm6 = vcmp.eq.f32.partialorder %v1330_v48, 8.507059e+37  ;;  %vm1372_vm0 = vweird.f32 %v3315_v4 }
 0x2e9   :  { %1151 = vmatmul.f32.gmra.mxu2 %v3082_v9  ;;  %1216 = vmatmul.f32.gmra.mxu3 %v3082_v9  ;;  %v1323_v9 = vsub.f32 1.0, %v1322_v21  ;;  %v1076_v21 = vadd.f32 %v1075_v35, %v3143_v2  ;;  %v1338_v35 = vsub.f32 1.0, %v1337_v24  ;;  %2262 = vrcp.f32 %v3299_v49 }
 0x2ea   :  { %v3344_v24 = vadd.f32 %v3109_v44, %v3235_v3  ;;  %v3350_v11 = vpop.eup %2256  ;;  %v1333_v57 = vor.u32 1.1754944e-38, %v1332_v23  ;;  %vm1416_vm12 = vweird.f32 %v3299_v49 }
 0x2eb   :  { %v1324_v58 = vmul.f32 %v3224_v19, %v1323_v9  ;;  %v1314_v9 = vsel %vm3322_vm2, %v3208_v31, %v1310_v37  ;;  %v1235_v0 = vadd.f32 %v1076_v21, %v825_v10  ;;  %v1367_v31 = vmul.f32 %v3315_v4, %v3239_v20  ;;  %v3356_v10 = vpop.f32.mrf.mxu1 }
 0x2ec   :  { %v3255_v22 = vpop.f32.mrf.mxu2  ;;  %v3257_v1 = vpop.f32.mrf.mxu3  ;;  %v3354_v37 = vadd.f32 %v3172_v17, %v3231_v51  ;;  %v3366_v21 = vadd.f32 %v3117_v61, %v3235_v3  ;;  %v3426_v17 = vadd.f32 %v3212_v12, %v3231_v51 }
 0x2ed   :  { %4210 = vst [vmem:[#allocation20_spill] sm:$0xff] %v3257_v1  ;;  %v1325_v59 = vadd.f32 %v3224_v19, %v1324_v58  ;;  %v1339_v58 = vmul.f32 %v3245_v60, %v1338_v35  ;;  %v2259_v40 = vpop.eup %2258  ;;  %v3383_v35 = vadd.f32 %v3187_v28, %v3231_v51  ;;  %v2057_v61 = vmul.f32 -1.442695, %v1235_v0 }
 0x2ee   :  { %4219 = vst [vmem:[#allocation25_spill] sm:$0xff] %v3354_v37  ;;  %v3379_v48 = vpop.eup %2260  ;;  %v1360_v37 = vand.u32 2147483647, %v3216_v27  ;;  %v1368_v28 = vsub.f32 1.0, %v1367_v31  ;;  %v3398_v0 = vadd.f32 1.0, %v2259_v40 }
 0x2ef   :  { %4222 = vst [vmem:[#allocation26_spill] sm:$0xff] %v3366_v21  ;;  %v1329_v6 = vsel %vm3374_vm7, %v3224_v19, %v1325_v59  ;;  %v1382_v19 = vmul.f32 %v3350_v11, %v3271_v50  ;;  %v1397_v31 = vmul.f32 %v3379_v48, %v3287_v62  ;;  %2264 = vpow2.f32 %v2057_v61 }
 0x2f0   :  { %4225 = vst [vmem:[#allocation27_spill] sm:$0xff] %v3383_v35  ;;  %v3396_v35 = vpop.eup %2262  ;;  %vm3434_vm14 = vcmp.eq.f32.partialorder %v1360_v37, 8.507059e+37  ;;  %v1369_v61 = vmul.f32 %v3315_v4, %v1368_v28  ;;  %2266 = vrcp.f32 %v3398_v0  ;;  %v828_v37 = vadd.f32 %v3180_v29, %v3151_v30 }
 0x2f1   :  { %1154 = vmatmul.f32.gmra.mxu2 %v3085_v56  ;;  %1219 = vmatmul.f32.gmra.mxu3 %v3085_v56  ;;  %v1347_v56 = vand.u32 2147483648, %v3210_v36  ;;  %4231 = vst [vmem:[#allocation31_spill] sm:$0xff] %v3426_v17  ;;  %v1377_v17 = vand.u32 2147483648, %v3239_v20  ;;  %v3471_v21 = vadd.f32 %v3140_v55, %v3235_v3  ;;  %vm1402_vm7 = vweird.f32 %v3379_v48 }
 0x2f2   :  { %vm1417_vm10 = vweird.f32 %v3396_v35  ;;  %vm3542_vm11 = vmor %vm1401_vm8, %vm1402_vm7  ;;  %v3643_v28 = vadd.f32 %v3203_v45, %v3235_v3 }
 0x2f3   :  { %v1348_v23 = vor.u32 1.1754944e-38, %v1347_v56  ;;  %v3414_v56 = vsel %vm3359_vm6, %v1333_v57, %v1329_v6  ;;  %v1412_v6 = vmul.f32 %v3396_v35, %v3299_v49  ;;  %v3457_v44 = vpop.f32.mrf.mxu1  ;;  %4238 = vst [vmem:[#allocation32_spill] sm:$0xff] %v3471_v21  ;;  %vm1387_vm6 = vweird.f32 %v3350_v11 }
 0x2f4   :  { %v3331_v14 = vpop.f32.mrf.mxu2  ;;  %v3333_v13 = vpop.f32.mrf.mxu3 }
 0x2f5   :  { %4217 = vst [vmem:[#allocation23_spill] sm:$0xff] %v3331_v14  ;;  %v3370_v14 = vsel %vm3326_vm3, %v1318_v15, %v1314_v9  ;;  %v1354_v9 = vmul.f32 %v3260_v41, %v1353_v52  ;;  %v3406_v52 = vadd.f32 %v3125_v38, %v3235_v3  ;;  %v1362_v38 = vand.u32 2147483648, %v3216_v27  ;;  %vm3495_vm3 = vmor %vm1371_vm1, %vm1372_vm0 }
 0x2f6   :  { %4218 = vst [vmem:[#allocation24_spill] sm:$0xff] %v3333_v13  ;;  %v1345_v13 = vand.u32 2147483647, %v3210_v36  ;;  %v1375_v36 = vand.u32 2147483647, %v3239_v20  ;;  %v1370_v27 = vadd.f32 %v3315_v4, %v1369_v61  ;;  %vm1431_vm0 = vweird.f32 %v3398_v0 }
 0x2f7   :  { %4228 = vst [vmem:[#allocation28_spill] sm:$0xff] %v3406_v52  ;;  %v1355_v40 = vadd.f32 %v3260_v41, %v1354_v9  ;;  %v1383_v9 = vsub.f32 1.0, %v1382_v19  ;;  %v1392_v19 = vand.u32 2147483648, %v3271_v50  ;;  %v1413_v52 = vsub.f32 1.0, %v1412_v6 }
 0x2f8   :  { %vm3391_vm9 = vcmp.eq.f32.partialorder %v1345_v13, 8.507059e+37  ;;  %vm3481_vm2 = vcmp.eq.f32.partialorder %v1375_v36, 8.507059e+37  ;;  %v1378_v6 = vor.u32 1.1754944e-38, %v1377_v17  ;;  %v1374_v17 = vsel %vm3495_vm3, %v3315_v4, %v1370_v27 }
 0x2f9   :  { %1157 = vmatmul.f32.gmra.mxu2 %v3088_v32  ;;  %1222 = vmatmul.f32.gmra.mxu3 %v3088_v32  ;;  %v1340_v32 = vadd.f32 %v3245_v60, %v1339_v58  ;;  %v3419_v58 = vpop.f32.mrf.mxu0  ;;  %v1359_v29 = vsel %vm3452_vm15, %v3260_v41, %v1355_v40  ;;  %v1384_v41 = vmul.f32 %v3350_v11, %v1383_v9  ;;  %v1393_v57 = vor.u32 1.1754944e-38, %v1392_v19 }
 0x2fb   :  { %v1344_v12 = vsel %vm3430_vm13, %v3245_v60, %v1340_v32  ;;  %v3460_v60 = vperm.slane %v3136_v7, 1  ;;  %v1363_v32 = vor.u32 1.1754944e-38, %v1362_v38 }
 0x2fc   :  { %v3408_v59 = vpop.f32.mrf.mxu2  ;;  %v3410_v13 = vpop.f32.mrf.mxu3  ;;  %v3475_v1 = vsel %vm3391_vm9, %v1348_v23, %v1344_v12  ;;  %v1414_v12 = vmul.f32 %v3396_v35, %v1413_v52  ;;  %v1407_v52 = vand.u32 2147483648, %v3287_v62  ;;  %vm3526_vm9 = vmor %vm1386_vm4, %vm1387_vm6 }
 0x2fd   :  { %4229 = vst [vmem:[#allocation29_spill] sm:$0xff] %v3408_v59  ;;  %v1398_v59 = vsub.f32 1.0, %v1397_v31  ;;  %v2265_v31 = vpop.eup %2264  ;;  %v3491_v20 = vsel %vm3434_vm14, %v1363_v32, %v1359_v29  ;;  %v1405_v29 = vand.u32 2147483647, %v3287_v62  ;;  %v1082_v62 = vadd.f32 %v3356_v10, %v3143_v2  ;;  %vm3559_vm14 = vmor %vm1416_vm12, %vm1417_vm10 }
 0x2fe   :  { %4230 = vst [vmem:[#allocation30_spill] sm:$0xff] %v3410_v13  ;;  %v1079_v13 = vadd.f32 %v3273_v34, %v3143_v2  ;;  %v1390_v34 = vand.u32 2147483647, %v3271_v50  ;;  %v3486_v21 = vpop.eup %2266 }
 0x2ff   :  { %v1399_v55 = vmul.f32 %v3379_v48, %v1398_v59  ;;  %v3504_v59 = vadd.f32 1.0, %v2265_v31  ;;  %v1427_v4 = vmul.f32 %v3486_v21, %v3398_v0  ;;  %v1415_v31 = vadd.f32 %v3396_v35, %v1414_v12 }
 0x300   :  { %v1236_v40 = vadd.f32 %v1079_v13, %v828_v37  ;;  %vm3500_vm5 = vcmp.eq.f32.partialorder %v1390_v34, 8.507059e+37  ;;  %v1385_v37 = vadd.f32 %v3350_v11, %v1384_v41  ;;  %v1422_v41 = vand.u32 2147483648, %v3299_v49 }
 0x301   :  { %v3510_v36 = vpop.f32.mrf.mxu0  ;;  %v1400_v34 = vadd.f32 %v3379_v48, %v1399_v55  ;;  %2268 = vrcp.f32 %v3504_v59  ;;  %v1428_v10 = vsub.f32 1.0, %v1427_v4  ;;  %vm1406_vm13 = vcmp.eq.f32.partialorder %v1405_v29, 8.507059e+37 }
 0x302   :  { %v2058_v32 = vmul.f32 -1.442695, %v1236_v40  ;;  %v831_v40 = vadd.f32 %v3201_v5, %v3151_v30  ;;  %v1389_v50 = vsel %vm3526_vm9, %v3350_v11, %v1385_v37  ;;  %v3555_v11 = vsel %vm3481_vm2, %v1378_v6, %v1374_v17 }
 0x303   :  { %v1404_v5 = vsel %vm3542_vm11, %v3379_v48, %v1400_v34  ;;  %v3565_v48 = vsel %vm3500_vm5, %v1393_v57, %v1389_v50  ;;  %v1423_v6 = vor.u32 1.1754944e-38, %v1422_v41  ;;  %v3576_v17 = vadd.f32 %v3241_v63, %v3231_v51 }
 0x304   :  { %v1113_v38 = vpop.f32.mrf.mxu2  ;;  %v3479_v61 = vpop.f32.mrf.mxu3  ;;  %v1237_v29 = vadd.f32 %v1082_v62, %v831_v40  ;;  %v3585_v57 = vadd.f32 %v3160_v47, %v3235_v3  ;;  %v3592_v4 = vperm.slane %v3136_v7, 2  ;;  %v1429_v63 = vmul.f32 %v3486_v21, %v1428_v10 }
 0x305   :  { %v1114_v15 = vadd.f32 %v1113_v38, %v3460_v60  ;;  %v1087_v38 = vpop.f32.mrf.mxu1  ;;  %v1085_v7 = vadd.f32 %v3457_v44, %v3143_v2  ;;  %v1435_v41 = vand.u32 2147483647, %v3398_v0  ;;  %vm1432_vm1 = vweird.f32 %v3486_v21 }
 0x306   :  { %v2059_v40 = vmul.f32 -1.442695, %v1237_v29  ;;  %v1430_v44 = vadd.f32 %v3486_v21, %v1429_v63  ;;  %v834_v10 = vadd.f32 %v3218_v25, %v3151_v30  ;;  %v3646_v25 = vadd.f32 %v1087_v38, %v3143_v2  ;;  %vm3653_vm3 = vmor %vm1431_vm0, %vm1432_vm1 }
 0x307   :  { %v1546_v9 = vadd.f32 %v1114_v15, %v3253_v53  ;;  %v1420_v53 = vand.u32 2147483647, %v3299_v49  ;;  %v1419_v49 = vsel %vm3559_vm14, %v3396_v35, %v1415_v31  ;;  %v3581_v13 = vpop.eup %2268  ;;  %v3589_v35 = vadd.f32 %v3318_v8, %v3231_v51 }
 0x308   :  { %v1442_v55 = vmul.f32 %v3581_v13, %v3504_v59  ;;  %vm3636_vm2 = vcmp.eq.f32.partialorder %v1435_v41, 8.507059e+37  ;;  %v1434_v45 = vsel %vm3653_vm3, %v3486_v21, %v1430_v44  ;;  %v1450_v38 = vand.u32 2147483647, %v3504_v59 }
 0x309   :  { %v2064_v27 = vmul.f32 -1.442695, %v1546_v9  ;;  %v1408_v9 = vor.u32 1.1754944e-38, %v1407_v52  ;;  %vm3570_vm15 = vcmp.eq.f32.partialorder %v1420_v53, 8.507059e+37  ;;  %v3601_v52 = vadd.f32 %v3419_v58, %v3231_v51  ;;  %v963_v47 = vpop.f32.mrf.mxu0 }
 0x30a   :  { %v3605_v8 = vsel %vm3570_vm15, %v1423_v6, %v1419_v49  ;;  %v1179_v58 = vadd.f32 %v3479_v61, %v3592_v4  ;;  %vm1446_vm4 = vweird.f32 %v3504_v59  ;;  %vm1447_vm5 = vweird.f32 %v3581_v13 }
 0x30b   :  { %2270 = vpow2.f32 %v2064_v27  ;;  %v3579_v34 = vsel %vm1406_vm13, %v1408_v9, %v1404_v5  ;;  %v3634_v9 = vadd.f32 %v3510_v36, %v3231_v51  ;;  %vm3732_vm10 = vmor %vm1446_vm4, %vm1447_vm5  ;;  %vm3749_vm12 = vcmp.eq.f32.partialorder %v1450_v38, 8.507059e+37 }
 0x30c   :  { %2272 = vpow2.f32 %v2058_v32  ;;  %v1116_v15 = vpop.f32.mrf.mxu2  ;;  %v3546_v23 = vpop.f32.mrf.mxu3  ;;  %v1866_v29 = vmul.f32 %v3370_v14, %v1179_v58 }
 0x30d   :  { %v1117_v12 = vadd.f32 %v1116_v15, %v3460_v60  ;;  %v3625_v15 = vadd.f32 %v3182_v33, %v3235_v3  ;;  %v1452_v33 = vand.u32 2147483648, %v3504_v59 }
 0x30e   :  { %v1882_v58 = vadd.f32 %v1866_v29, %v3249_v43 }
 0x30f   :  { %v1547_v32 = vadd.f32 %v1117_v12, %v3268_v46  ;;  %v3597_v46 = vadd.f32 %v3170_v39, %v3235_v3  ;;  %v1437_v39 = vand.u32 2147483648, %v3398_v0  ;;  %v1090_v12 = vpop.f32.mrf.mxu1  ;;  %v1238_v0 = vadd.f32 %v1085_v7, %v834_v10 }
 0x310   :  { %v3671_v41 = vor.u32 1.1754944e-38, %v1452_v33 }
 0x311   :  { %v2271_v27 = vpop.eup %2270  ;;  %v2065_v53 = vmul.f32 -1.442695, %v1547_v32  ;;  %v1438_v49 = vor.u32 1.1754944e-38, %v1437_v39  ;;  %v1443_v32 = vsub.f32 1.0, %v1442_v55  ;;  %v3676_v39 = vadd.f32 %v3220_v18, %v3235_v3 }
 0x312   :  { %v2273_v19 = vpop.eup %2272  ;;  %v3609_v31 = vadd.f32 1.0, %v2271_v27 }
 0x313   :  { %2274 = vpow2.f32 %v2065_v53  ;;  %v3627_v5 = vadd.f32 1.0, %v2273_v19  ;;  %v3667_v19 = vadd.f32 %v1090_v12, %v3143_v2  ;;  %v3681_v7 = vsel %vm3636_vm2, %v1438_v49, %v1434_v45 }
 0x314   :  { %2276 = vrcp.f32 %v3609_v31  ;;  %v1119_v62 = vpop.f32.mrf.mxu2  ;;  %v3618_v50 = vpop.f32.mrf.mxu3  ;;  %v1444_v18 = vmul.f32 %v3581_v13, %v1443_v32  ;;  %v2060_v12 = vmul.f32 -1.442695, %v1238_v0  ;;  %v1637_v49 = vand.u32 2147483648, %v3609_v31 }
 0x315   :  { %v1120_v61 = vadd.f32 %v1119_v62, %v3460_v60  ;;  %2278 = vpow2.f32 %v2059_v40  ;;  %v1467_v21 = vand.u32 2147483648, %v3627_v5  ;;  %v966_v40 = vpop.f32.mrf.mxu0  ;;  %v1182_v62 = vadd.f32 %v3546_v23, %v3592_v4 }
 0x316   :  { %2280 = vrcp.f32 %v3627_v5  ;;  %v3694_v43 = vadd.f32 %v966_v40, %v3231_v51  ;;  %v1465_v23 = vand.u32 2147483647, %v3627_v5  ;;  %v1635_v45 = vand.u32 2147483647, %v3609_v31 }
 0x317   :  { %v1548_v6 = vadd.f32 %v1120_v61, %v3281_v16  ;;  %v3664_v16 = vadd.f32 %v963_v47, %v3231_v51  ;;  %v3698_v33 = vor.u32 1.1754944e-38, %v1467_v21  ;;  %v1093_v36 = vpop.f32.mrf.mxu1  ;;  %v1867_v0 = vmul.f32 %v3414_v56, %v1182_v62 }
 0x318   :  { %vm1631_vm7 = vweird.f32 %v3609_v31  ;;  %vm1636_vm9 = vcmp.eq.f32.partialorder %v1635_v45, 8.507059e+37  ;;  %vm1461_vm1 = vweird.f32 %v3627_v5 }
 0x319   :  { %v2275_v63 = vpop.eup %2274  ;;  %v2066_v27 = vmul.f32 -1.442695, %v1548_v6 }
 0x31a   :  { %v2277_v53 = vpop.eup %2276  ;;  %v3669_v14 = vadd.f32 1.0, %v2275_v63 }
 0x31b   :  { %v1627_v47 = vmul.f32 %v2277_v53, %v3609_v31  ;;  %2282 = vpow2.f32 %v2066_v27  ;;  %v2279_v10 = vpop.eup %2278  ;;  %vm1632_vm6 = vweird.f32 %v2277_v53  ;;  %v3708_v27 = vadd.f32 %v3581_v13, %v1444_v18 }
 0x31c   :  { %2284 = vrcp.f32 %v3669_v14  ;;  %v1122_v44 = vpop.f32.mrf.mxu2  ;;  %v3687_v55 = vpop.f32.mrf.mxu3  ;;  %v3704_v63 = vadd.f32 1.0, %v2279_v10  ;;  %vm1633_vm8 = vmor %vm1631_vm7, %vm1632_vm6  ;;  %v1883_v31 = vadd.f32 %v1867_v0, %v3264_v54  ;;  %v1650_v45 = vand.u32 2147483647, %v3669_v14 }
 0x31d   :  { %v1628_v61 = vsub.f32 1.0, %v1627_v47  ;;  %v1123_v37 = vadd.f32 %v1122_v44, %v3460_v60  ;;  %v3700_v6 = vpop.eup %2280  ;;  %2286 = vtanh.f32 %v1882_v58  ;;  %vm1646_vm13 = vweird.f32 %v3669_v14 }
 0x31e   :  { %2288 = vpow2.f32 %v2060_v12  ;;  %v1457_v56 = vmul.f32 %v3700_v6, %v3627_v5  ;;  %v1480_v59 = vand.u32 2147483647, %v3704_v63  ;;  %vm1651_vm15 = vcmp.eq.f32.partialorder %v1650_v45, 8.507059e+37 }
 0x31f   :  { %v1629_v29 = vmul.f32 %v2277_v53, %v1628_v61  ;;  %v1549_v32 = vadd.f32 %v1123_v37, %v3308_v42  ;;  %v3712_v61 = vadd.f32 %v1093_v36, %v3143_v2  ;;  %v1638_v42 = vor.u32 1.1754944e-38, %v1637_v49 }
 0x320   :  { %v1185_v2 = vadd.f32 %v3618_v50, %v3592_v4  ;;  %v1652_v50 = vand.u32 2147483648, %v3669_v14  ;;  %v1458_v54 = vsub.f32 1.0, %v1457_v56  ;;  %vm1462_vm0 = vweird.f32 %v3700_v6 }
 0x321   :  { %v2283_v40 = vpop.eup %2282  ;;  %v1630_v21 = vadd.f32 %v2277_v53, %v1629_v29  ;;  %v2067_v47 = vmul.f32 -1.442695, %v1549_v32  ;;  %vm3795_vm6 = vcmp.eq.f32.partialorder %v1465_v23, 8.507059e+37 }
 0x322   :  { %v2285_v44 = vpop.eup %2284  ;;  %v3714_v10 = vadd.f32 1.0, %v2283_v40  ;;  %v1459_v45 = vmul.f32 %v3700_v6, %v1458_v54 }
 0x323   :  { %v1634_v58 = vsel %vm1633_vm8, %v2277_v53, %v1630_v21  ;;  %v1642_v62 = vmul.f32 %v2285_v44, %v3669_v14  ;;  %2290 = vpow2.f32 %v2067_v47  ;;  %v837_v53 = vadd.f32 %v3255_v22, %v3151_v30  ;;  %v2287_v29 = vpop.eup %2286  ;;  %v2390_v21 = vld [vmem:[#allocation7] sm:$0xff]  ;;  %vm3811_vm8 = vmor %vm1461_vm1, %vm1462_vm0 }
 0x324   :  { %v1639_v18 = vsel %vm1636_vm9, %v1638_v42, %v1634_v58  ;;  %2292 = vrcp.f32 %v3714_v10  ;;  %v1125_v12 = vpop.f32.mrf.mxu2  ;;  %v3723_v37 = vpop.f32.mrf.mxu3  ;;  %v1449_v22 = vsel %vm3732_vm10, %v3581_v13, %v3708_v27  ;;  %vm1647_vm11 = vweird.f32 %v2285_v44 }
 0x325   :  { %2294 = vrcp.f32 %v3704_v63  ;;  %v1914_v49 = vsub.f32 1.0, %v1639_v18  ;;  %v1643_v36 = vsub.f32 1.0, %v1642_v62  ;;  %v1126_v32 = vadd.f32 %v1125_v12, %v3460_v60  ;;  %v3743_v0 = vpop.eup %2288  ;;  %vm1648_vm14 = vmor %vm1646_vm13, %vm1647_vm11  ;;  %v4263_v12 = vld [vmem:[#allocation21_spill] sm:$0xff] }
 0x326   :  { %v1946_v47 = vmul.f32 %v2390_v21, %v1639_v18  ;;  %2296 = vtanh.f32 %v1883_v31  ;;  %v1868_v58 = vmul.f32 %v3475_v1, %v1185_v2  ;;  %v1239_v27 = vadd.f32 %v3646_v25, %v837_v53 }
 0x327   :  { %v1930_v40 = vmul.f32 %v2287_v29, %v1914_v49  ;;  %v1644_v42 = vmul.f32 %v2285_v44, %v1643_v36  ;;  %v1550_v62 = vadd.f32 %v1126_v32, %v3344_v24  ;;  %v1653_v31 = vor.u32 1.1754944e-38, %v1652_v50 }
 0x328   :  { %v1884_v53 = vadd.f32 %v1868_v58, %v3277_v26  ;;  %v1188_v14 = vadd.f32 %v3687_v55, %v3592_v4  ;;  %v1665_v26 = vand.u32 2147483647, %v3714_v10  ;;  %vm1661_vm3 = vweird.f32 %v3714_v10 }
 0x329   :  { %v2291_v13 = vpop.eup %2290  ;;  %v1962_v49 = vadd.f32 %v1946_v47, %v1930_v40  ;;  %v1645_v18 = vadd.f32 %v2285_v44, %v1644_v42  ;;  %v2068_v24 = vmul.f32 -1.442695, %v1550_v62  ;;  %v2061_v40 = vmul.f32 -1.442695, %v1239_v27  ;;  %v2391_v62 = vld [vmem:[#allocation7 + $0x8] sm:$0xff] }
 0x32a   :  { %v2293_v36 = vpop.eup %2292  ;;  %v3755_v1 = vadd.f32 1.0, %v2291_v13  ;;  %v1667_v42 = vand.u32 2147483648, %v3714_v10  ;;  %v4261_v27 = vld [vmem:[#allocation20_spill] sm:$0xff]  ;;  %v1869_v54 = vmul.f32 %v3491_v20, %v1188_v14  ;;  %vm1666_vm5 = vcmp.eq.f32.partialorder %v1665_v26, 8.507059e+37 }
 0x32b   :  { %v3758_v38 = vpop.eup %2294  ;;  %v1978_v2 = vmax.f32 %v1962_v49, 0.0  ;;  %v1649_v29 = vsel %vm1648_vm14, %v2285_v44, %v1645_v18  ;;  %v1657_v56 = vmul.f32 %v2293_v36, %v3714_v10  ;;  %vm1662_vm2 = vweird.f32 %v2293_v36 }
 0x32c   :  { %v1654_v25 = vsel %vm1651_vm15, %v1653_v31, %v1649_v29  ;;  %2298 = vrcp.f32 %v3755_v1  ;;  %v1128_v50 = vpop.f32.mrf.mxu2  ;;  %v3765_v32 = vpop.f32.mrf.mxu3  ;;  %v3775_v18 = vadd.f32 %v4261_v27, %v3235_v3  ;;  %v4262_v31 = vld [vmem:[#allocation26_spill] sm:$0xff]  ;;  %vm1663_vm4 = vmor %vm1661_vm3, %vm1662_vm2  ;;  %v3788_v10 = vadd.f32 1.0, %v3743_v0 }
 0x32d   :  { %1994 = vst [vmem:[#allocation14] sm:$0xff] %v1978_v2  ;;  %v1915_v21 = vsub.f32 1.0, %v1654_v25  ;;  %v1658_v44 = vsub.f32 1.0, %v1657_v56  ;;  %v2297_v47 = vpop.eup %2296  ;;  %2300 = vpow2.f32 %v2068_v24  ;;  %v1129_v58 = vadd.f32 %v1128_v50, %v3460_v60  ;;  %v2392_v27 = vld [vmem:[#allocation7 + $0x10] sm:$0xff] }
 0x32e   :  { %v1947_v13 = vmul.f32 %v2391_v62, %v1654_v25  ;;  %2302 = vtanh.f32 %v1884_v53  ;;  %v3783_v56 = vsel %vm3749_vm12, %v3671_v41, %v1449_v22  ;;  %v1668_v50 = vor.u32 1.1754944e-38, %v1667_v42 }
 0x32f   :  { %v1931_v55 = vmul.f32 %v2297_v47, %v1915_v21  ;;  %v1659_v49 = vmul.f32 %v2293_v36, %v1658_v44  ;;  %v1551_v2 = vadd.f32 %v1129_v58, %v4262_v31  ;;  %2304 = vpow2.f32 %v2061_v40 }
 0x330   :  { %v1460_v53 = vadd.f32 %v3700_v6, %v1459_v45  ;;  %v1885_v41 = vadd.f32 %v1869_v54, %v4263_v12  ;;  %v1191_v0 = vadd.f32 %v3723_v37, %v3592_v4  ;;  %v1682_v62 = vand.u32 2147483648, %v3755_v1  ;;  %v2393_v37 = vld [vmem:[#allocation7 + $0x18] sm:$0xff] }
 0x331   :  { %v1963_v29 = vadd.f32 %v1947_v13, %v1931_v55  ;;  %v1660_v24 = vadd.f32 %v2293_v36, %v1659_v49  ;;  %v2069_v21 = vmul.f32 -1.442695, %v1551_v2  ;;  %v1680_v13 = vand.u32 2147483647, %v3755_v1 }
 0x332   :  { %v2299_v25 = vpop.eup %2298  ;;  %vm1676_vm9 = vweird.f32 %v3755_v1  ;;  %v1472_v5 = vmul.f32 %v3758_v38, %v3704_v63  ;;  %vm1477_vm0 = vweird.f32 %v3758_v38  ;;  %vm1476_vm3 = vweird.f32 %v3704_v63 }
 0x333   :  { %v1979_v44 = vmax.f32 %v1963_v29, 0.0  ;;  %v1664_v20 = vsel %vm1663_vm4, %v2293_v36, %v1660_v24  ;;  %v1672_v14 = vmul.f32 %v2299_v25, %v3755_v1  ;;  %v2301_v47 = vpop.eup %2300  ;;  %2306 = vpow2.f32 %v2069_v21  ;;  %v4268_v29 = vld [vmem:[#allocation28_spill] sm:$0xff]  ;;  %v4269_v1 = vld [vmem:[#allocation23_spill] sm:$0xff] }
 0x334   :  { %v1669_v58 = vsel %vm1666_vm5, %v1668_v50, %v1664_v20  ;;  %v1131_v22 = vpop.f32.mrf.mxu2  ;;  %v3791_v40 = vpop.f32.mrf.mxu3  ;;  %v3799_v26 = vadd.f32 1.0, %v2301_v47  ;;  %vm1677_vm7 = vweird.f32 %v2299_v25  ;;  %v1464_v50 = vsel %vm3811_vm8, %v3700_v6, %v1460_v53 }
 0x335   :  { %1995 = vst [vmem:[#allocation14 + $0x8] sm:$0xff] %v1979_v44  ;;  %v1916_v36 = vsub.f32 1.0, %v1669_v58  ;;  %v1673_v42 = vsub.f32 1.0, %v1672_v14  ;;  %v2303_v55 = vpop.eup %2302  ;;  %v1132_v49 = vadd.f32 %v1131_v22, %v3460_v60  ;;  %v1948_v54 = vmul.f32 %v2392_v27, %v1669_v58  ;;  %vm1678_vm10 = vmor %vm1676_vm9, %vm1677_vm7 }
 0x336   :  { %2308 = vrcp.f32 %v3799_v26  ;;  %v3815_v2 = vpop.eup %2304  ;;  %v1482_v21 = vand.u32 2147483648, %v3704_v63  ;;  %v1683_v47 = vor.u32 1.1754944e-38, %v1682_v62  ;;  %v1870_v58 = vmul.f32 %v3555_v11, %v1191_v0  ;;  %vm3920_vm9 = vmor %vm1476_vm3, %vm1477_vm0 }
 0x337   :  { %v1932_v23 = vmul.f32 %v2303_v55, %v1916_v36  ;;  %v1674_v31 = vmul.f32 %v2299_v25, %v1673_v42  ;;  %2310 = vtanh.f32 %v1885_v41  ;;  %v1552_v24 = vadd.f32 %v1132_v49, %v4268_v29 }
 0x338   :  { %2312 = vrcp.f32 %v3788_v10  ;;  %vm1681_vm11 = vcmp.eq.f32.partialorder %v1680_v13, 8.507059e+37  ;;  %v840_v22 = vadd.f32 %v4269_v1, %v3151_v30  ;;  %v1194_v42 = vadd.f32 %v3765_v32, %v3592_v4 }
 0x339   :  { %v1964_v44 = vadd.f32 %v1948_v54, %v1932_v23  ;;  %v1675_v20 = vadd.f32 %v2299_v25, %v1674_v31  ;;  %v2307_v14 = vpop.eup %2306  ;;  %v2070_v12 = vmul.f32 -1.442695, %v1552_v24  ;;  %v3842_v0 = vor.u32 1.1754944e-38, %v1482_v21  ;;  %v4270_v24 = vld [vmem:[#allocation22_spill] sm:$0xff] }
 0x33a   :  { %v3828_v53 = vadd.f32 1.0, %v2307_v14  ;;  %v1473_v32 = vsub.f32 1.0, %v1472_v5  ;;  %v1495_v27 = vand.u32 2147483647, %v3788_v10  ;;  %v1497_v54 = vand.u32 2147483648, %v3788_v10 }
 0x33b   :  { %v1980_v41 = vmax.f32 %v1964_v44, 0.0  ;;  %v1679_v6 = vsel %vm1678_vm10, %v2299_v25, %v1675_v20  ;;  %2314 = vpow2.f32 %v2070_v12  ;;  %v3840_v25 = vsel %vm3795_vm6, %v3698_v33, %v1464_v50  ;;  %v4271_v33 = vld [vmem:[#allocation24_spill] sm:$0xff] }
 0x33c   :  { %v1684_v36 = vsel %vm1681_vm11, %v1683_v47, %v1679_v6  ;;  %v1134_v55 = vpop.f32.mrf.mxu2  ;;  %v3834_v49 = vpop.f32.mrf.mxu3  ;;  %2316 = vrcp.f32 %v3828_v53  ;;  %v1886_v44 = vadd.f32 %v1870_v58, %v4270_v24  ;;  %v3853_v50 = vadd.f32 %v4271_v33, %v3235_v3  ;;  %v4272_v6 = vld [vmem:[#allocation32_spill] sm:$0xff] }
 0x33d   :  { %v2309_v62 = vpop.eup %2308  ;;  %1996 = vst [vmem:[#allocation14 + $0x10] sm:$0xff] %v1980_v41  ;;  %v1917_v11 = vsub.f32 1.0, %v1684_v36  ;;  %v1949_v29 = vmul.f32 %v2393_v37, %v1684_v36  ;;  %v1135_v20 = vadd.f32 %v1134_v55, %v3460_v60  ;;  %v1240_v21 = vadd.f32 %v3667_v19, %v840_v22 }
 0x33e   :  { %v2311_v13 = vpop.eup %2310  ;;  %v1687_v23 = vmul.f32 %v2309_v62, %v3799_v26  ;;  %v1871_v14 = vmul.f32 %v3565_v48, %v1194_v42  ;;  %v1697_v12 = vand.u32 2147483648, %v3799_v26  ;;  %v1695_v41 = vand.u32 2147483647, %v3799_v26 }
 0x33f   :  { %v1933_v31 = vmul.f32 %v2311_v13, %v1917_v11  ;;  %v3849_v45 = vpop.eup %2312  ;;  %v1553_v58 = vadd.f32 %v1135_v20, %v4272_v6  ;;  %vm1692_vm12 = vweird.f32 %v2309_v62  ;;  %v1474_v55 = vmul.f32 %v3758_v38, %v1473_v32 }
 0x340   :  { %v1688_v5 = vsub.f32 1.0, %v1687_v23  ;;  %v3861_v11 = vor.u32 1.1754944e-38, %v1497_v54  ;;  %2318 = vtanh.f32 %v1886_v44  ;;  %vm1691_vm13 = vweird.f32 %v3799_v26  ;;  %v4273_v23 = vld [vmem:[#allocation25_spill] sm:$0xff] }
 0x341   :  { %v1965_v47 = vadd.f32 %v1949_v29, %v1933_v31  ;;  %v2315_v1 = vpop.eup %2314  ;;  %v2071_v48 = vmul.f32 -1.442695, %v1553_v58  ;;  %v1887_v31 = vadd.f32 %v1871_v14, %v4273_v23  ;;  %vm1693_vm14 = vmor %vm1691_vm13, %vm1692_vm12  ;;  %v1698_v32 = vor.u32 1.1754944e-38, %v1697_v12 }
 0x342   :  { %v1689_v36 = vmul.f32 %v2309_v62, %v1688_v5  ;;  %v2317_v13 = vpop.eup %2316  ;;  %v3863_v19 = vadd.f32 1.0, %v2315_v1  ;;  %vm1696_vm15 = vcmp.eq.f32.partialorder %v1695_v41, 8.507059e+37  ;;  %v1197_v54 = vadd.f32 %v3791_v40, %v3592_v4  ;;  %v2394_v1 = vld [vmem:[#allocation7 + $0x20] sm:$0xff] }
 0x343   :  { %v1981_v37 = vmax.f32 %v1965_v47, 0.0  ;;  %v1702_v42 = vmul.f32 %v2317_v13, %v3828_v53  ;;  %v2062_v33 = vmul.f32 -1.442695, %v1240_v21  ;;  %v1712_v14 = vand.u32 2147483648, %v3828_v53 }
 0x344   :  { %v1690_v22 = vadd.f32 %v2309_v62, %v1689_v36  ;;  %v1137_v29 = vpop.f32.mrf.mxu2  ;;  %v3868_v24 = vpop.f32.mrf.mxu3  ;;  %2320 = vrcp.f32 %v3863_v19  ;;  %v1710_v47 = vand.u32 2147483647, %v3828_v53  ;;  %vm1707_vm1 = vweird.f32 %v2317_v13 }
 0x345   :  { %1997 = vst [vmem:[#allocation14 + $0x18] sm:$0xff] %v1981_v37  ;;  %v1703_v26 = vsub.f32 1.0, %v1702_v42  ;;  %2322 = vpow2.f32 %v2071_v48  ;;  %v1138_v20 = vadd.f32 %v1137_v29, %v3460_v60  ;;  %vm1706_vm2 = vweird.f32 %v3828_v53 }
 0x346   :  { %v1694_v44 = vsel %vm1693_vm14, %v2309_v62, %v1690_v22  ;;  %v2319_v58 = vpop.eup %2318  ;;  %2324 = vtanh.f32 %v1887_v31  ;;  %v1872_v40 = vmul.f32 %v3579_v34, %v1197_v54  ;;  %v3882_v62 = vadd.f32 %v3758_v38, %v1474_v55  ;;  %vm1708_vm4 = vmor %vm1706_vm2, %vm1707_vm1 }
 0x347   :  { %v1699_v5 = vsel %vm1696_vm15, %v1698_v32, %v1694_v44  ;;  %v1704_v41 = vmul.f32 %v2317_v13, %v1703_v26  ;;  %v1554_v6 = vadd.f32 %v1138_v20, %v3585_v57  ;;  %2326 = vpow2.f32 %v2062_v33  ;;  %v4274_v57 = vld [vmem:[#allocation29_spill] sm:$0xff]  ;;  %v4275_v44 = vld [vmem:[#allocation27_spill] sm:$0xff] }
 0x348   :  { %v1918_v12 = vsub.f32 1.0, %v1699_v5  ;;  %v1950_v36 = vmul.f32 %v2394_v1, %v1699_v5  ;;  %v843_v42 = vadd.f32 %v4274_v57, %v3151_v30  ;;  %v1713_v53 = vor.u32 1.1754944e-38, %v1712_v14 }
 0x349   :  { %v1705_v37 = vadd.f32 %v2317_v13, %v1704_v41  ;;  %v2072_v48 = vmul.f32 -1.442695, %v1554_v6  ;;  %v1487_v34 = vmul.f32 %v3849_v45, %v3788_v10  ;;  %vm1711_vm5 = vcmp.eq.f32.partialorder %v1710_v47, 8.507059e+37 }
 0x34a   :  { %v1934_v21 = vmul.f32 %v2319_v58, %v1918_v12  ;;  %v2321_v22 = vpop.eup %2320  ;;  %v1888_v26 = vadd.f32 %v1872_v40, %v4275_v44  ;;  %v1200_v14 = vadd.f32 %v3834_v49, %v3592_v4  ;;  %v1725_v47 = vand.u32 2147483647, %v3863_v19  ;;  %v2395_v58 = vld [vmem:[#allocation7 + $0x28] sm:$0xff] }
 0x34b   :  { %v2323_v55 = vpop.eup %2322  ;;  %v1709_v31 = vsel %vm1708_vm4, %v2317_v13, %v1705_v37  ;;  %v1717_v29 = vmul.f32 %v2321_v22, %v3863_v19  ;;  %2328 = vpow2.f32 %v2072_v48  ;;  %vm1722_vm6 = vweird.f32 %v2321_v22 }
 0x34c   :  { %v1966_v23 = vadd.f32 %v1950_v36, %v1934_v21  ;;  %v1140_v32 = vpop.f32.mrf.mxu2  ;;  %v1714_v54 = vsel %vm1711_vm5, %v1713_v53, %v1709_v31  ;;  %v3892_v20 = vadd.f32 1.0, %v2323_v55  ;;  %v3896_v12 = vpop.f32.mrf.mxu3  ;;  %v1727_v13 = vand.u32 2147483648, %v3863_v19 }
 0x34d   :  { %v1919_v33 = vsub.f32 1.0, %v1714_v54  ;;  %v1718_v5 = vsub.f32 1.0, %v1717_v29  ;;  %v2325_v41 = vpop.eup %2324  ;;  %v1951_v40 = vmul.f32 %v2395_v58, %v1714_v54  ;;  %v1141_v1 = vadd.f32 %v1140_v32, %v3460_v60 }
 0x34e   :  { %v1982_v30 = vmax.f32 %v1966_v23, 0.0  ;;  %2330 = vrcp.f32 %v3892_v20  ;;  %vm3904_vm7 = vcmp.eq.f32.partialorder %v1480_v59, 8.507059e+37  ;;  %v3908_v36 = vpop.eup %2326  ;;  %v3911_v37 = vadd.f32 1.0, %v3815_v2 }
 0x34f   :  { %v1935_v6 = vmul.f32 %v2325_v41, %v1919_v33  ;;  %v1719_v21 = vmul.f32 %v2321_v22, %v1718_v5  ;;  %v1241_v48 = vadd.f32 %v3712_v61, %v843_v42  ;;  %2332 = vtanh.f32 %v1888_v26  ;;  %v4280_v5 = vld [vmem:[#allocation31_spill] sm:$0xff] }
 0x350   :  { %1998 = vst [vmem:[#allocation14 + $0x20] sm:$0xff] %v1982_v30  ;;  %v1488_v57 = vsub.f32 1.0, %v1487_v34  ;;  %vm1721_vm8 = vweird.f32 %v3863_v19  ;;  %v1555_v23 = vadd.f32 %v1141_v1, %v3597_v46  ;;  %v1728_v61 = vor.u32 1.1754944e-38, %v1727_v13 }
 0x351   :  { %v1967_v53 = vadd.f32 %v1951_v40, %v1935_v6  ;;  %v1720_v55 = vadd.f32 %v2321_v22, %v1719_v21  ;;  %v2329_v2 = vpop.eup %2328  ;;  %vm1723_vm10 = vmor %vm1721_vm8, %vm1722_vm6  ;;  %vm1726_vm11 = vcmp.eq.f32.partialorder %v1725_v47, 8.507059e+37  ;;  %v1873_v42 = vmul.f32 %v3605_v8, %v1200_v14 }
 0x352   :  { %v1479_v46 = vsel %vm3920_vm9, %v3758_v38, %v3882_v62  ;;  %v3930_v31 = vadd.f32 1.0, %v2329_v2  ;;  %v2073_v63 = vmul.f32 -1.442695, %v1555_v23  ;;  %v2063_v54 = vmul.f32 -1.442695, %v1241_v48 }
 0x353   :  { %v1983_v19 = vmax.f32 %v1967_v53, 0.0  ;;  %v1724_v34 = vsel %vm1723_vm10, %v2321_v22, %v1720_v55  ;;  %vm1492_vm12 = vweird.f32 %v3849_v45  ;;  %2334 = vrcp.f32 %v3911_v37  ;;  %v2396_v22 = vld [vmem:[#allocation7 + $0x30] sm:$0xff] }
 0x354   :  { %v1143_v29 = vpop.f32.mrf.mxu2  ;;  %v2331_v32 = vpop.eup %2330  ;;  %v1729_v44 = vsel %vm1726_vm11, %v1728_v61, %v1724_v34  ;;  %v1489_v38 = vmul.f32 %v3849_v45, %v1488_v57  ;;  %vm1491_vm13 = vweird.f32 %v3788_v10  ;;  %v1889_v14 = vadd.f32 %v1873_v42, %v4280_v5 }
 0x355   :  { %v1144_v26 = vadd.f32 %v1143_v29, %v3460_v60  ;;  %1999 = vst [vmem:[#allocation14 + $0x28] sm:$0xff] %v1983_v19  ;;  %v1920_v8 = vsub.f32 1.0, %v1729_v44  ;;  %v1732_v30 = vmul.f32 %v2331_v32, %v3892_v20  ;;  %v2333_v62 = vpop.eup %2332  ;;  %v1952_v33 = vmul.f32 %v2396_v22, %v1729_v44  ;;  %v3943_v58 = vpop.f32.mrf.mxu3  ;;  %vm3976_vm2 = vmor %vm1491_vm13, %vm1492_vm12 }
 0x356   :  { %2336 = vrcp.f32 %v3930_v31  ;;  %v1203_v41 = vadd.f32 %v3868_v24, %v3592_v4  ;;  %v1742_v40 = vand.u32 2147483648, %v3892_v20  ;;  %v1740_v21 = vand.u32 2147483647, %v3892_v20 }
 0x357   :  { %v1936_v13 = vmul.f32 %v2333_v62, %v1920_v8  ;;  %v1733_v47 = vsub.f32 1.0, %v1732_v30  ;;  %2338 = vpow2.f32 %v2073_v63  ;;  %v1556_v6 = vadd.f32 %v1144_v26, %v3625_v15 }
 0x358   :  { %2340 = vpow2.f32 %v2063_v54  ;;  %v3950_v1 = vsel %vm3904_vm7, %v3842_v0, %v1479_v46  ;;  %vm1737_vm14 = vweird.f32 %v2331_v32  ;;  %vm1736_vm15 = vweird.f32 %v3892_v20 }
 0x359   :  { %v1968_v48 = vadd.f32 %v1952_v33, %v1936_v13  ;;  %v1734_v57 = vmul.f32 %v2331_v32, %v1733_v47  ;;  %v2074_v24 = vmul.f32 -1.442695, %v1556_v6  ;;  %2342 = vtanh.f32 %v1889_v14  ;;  %v3957_v55 = vpop.eup %2334  ;;  %vm1738_vm0 = vmor %vm1736_vm15, %vm1737_vm14  ;;  %v2397_v33 = vld [vmem:[#allocation7 + $0x38] sm:$0xff] }
 0x35a   :  { %v1874_v15 = vmul.f32 %v3681_v7, %v1203_v41  ;;  %v3955_v53 = vadd.f32 %v3849_v45, %v1489_v38  ;;  %v1206_v0 = vadd.f32 %v3896_v12, %v3592_v4  ;;  %v1743_v61 = vor.u32 1.1754944e-38, %v1742_v40 }
 0x35b   :  { %v1984_v23 = vmax.f32 %v1968_v48, 0.0  ;;  %v1735_v59 = vadd.f32 %v2331_v32, %v1734_v57  ;;  %2344 = vpow2.f32 %v2074_v24  ;;  %v1510_v42 = vand.u32 2147483647, %v3911_v37 }
 0x35c   :  { %v1146_v49 = vpop.f32.mrf.mxu2  ;;  %v2337_v2 = vpop.eup %2336  ;;  %v1512_v7 = vand.u32 2147483648, %v3911_v37  ;;  %v3965_v19 = vadd.f32 1.0, %v3908_v36  ;;  %vm1741_vm1 = vcmp.eq.f32.partialorder %v1740_v21, 8.507059e+37  ;;  %v1890_v54 = vadd.f32 %v1874_v15, %v3576_v17 }
 0x35d   :  { %v1147_v20 = vadd.f32 %v1146_v49, %v3460_v60  ;;  %v2339_v46 = vpop.eup %2338  ;;  %2000 = vst [vmem:[#allocation14 + $0x30] sm:$0xff] %v1984_v23  ;;  %v1739_v34 = vsel %vm1738_vm0, %v2331_v32, %v1735_v59  ;;  %v1747_v12 = vmul.f32 %v2337_v2, %v3930_v31  ;;  %vm3982_vm3 = vcmp.eq.f32.partialorder %v1495_v27, 8.507059e+37 }
 0x35e   :  { %v2341_v63 = vpop.eup %2340  ;;  %v1744_v29 = vsel %vm1741_vm1, %v1743_v61, %v1739_v34  ;;  %v3969_v44 = vadd.f32 1.0, %v2339_v46  ;;  %v1875_v30 = vmul.f32 %v3783_v56, %v1206_v0  ;;  %vm1752_vm4 = vweird.f32 %v2337_v2  ;;  %v1211_v56 = vpop.f32.mrf.mxu3 }
 0x35f   :  { %v1557_v26 = vadd.f32 %v1147_v20, %v3643_v28  ;;  %v1921_v8 = vsub.f32 1.0, %v1744_v29  ;;  %v1748_v17 = vsub.f32 1.0, %v1747_v12  ;;  %v1494_v28 = vsel %vm3976_vm2, %v3849_v45, %v3955_v53  ;;  %v2343_v38 = vpop.eup %2342 }
 0x360   :  { %v1757_v62 = vand.u32 2147483648, %v3930_v31  ;;  %v1755_v22 = vand.u32 2147483647, %v3930_v31  ;;  %2346 = vrcp.f32 %v3969_v44  ;;  %v1953_v5 = vmul.f32 %v2397_v33, %v1744_v29  ;;  %v2398_v29 = vld [vmem:[#allocation7 + $0x40] sm:$0xff] }
 0x361   :  { %v2345_v10 = vpop.eup %2344  ;;  %v1937_v27 = vmul.f32 %v2343_v38, %v1921_v8  ;;  %v1749_v14 = vmul.f32 %v2337_v2, %v1748_v17  ;;  %v2075_v41 = vmul.f32 -1.442695, %v1557_v26  ;;  %v3994_v13 = vadd.f32 1.0, %v2341_v63 }
 0x362   :  { %2348 = vtanh.f32 %v1890_v54  ;;  %v3996_v47 = vadd.f32 1.0, %v2345_v10  ;;  %v4000_v45 = vmul.f32 %v3957_v55, %v3911_v37  ;;  %vm1751_vm5 = vweird.f32 %v3930_v31  ;;  %v4285_v31 = vld [vmem:[#allocation30_spill] sm:$0xff] }
 0x363   :  { %v1969_v6 = vadd.f32 %v1953_v5, %v1937_v27  ;;  %v1750_v40 = vadd.f32 %v2337_v2, %v1749_v14  ;;  %2350 = vpow2.f32 %v2075_v41  ;;  %vm1753_vm6 = vmor %vm1751_vm5, %vm1752_vm4  ;;  %v1758_v48 = vor.u32 1.1754944e-38, %v1757_v62 }
 0x364   :  { %v1149_v21 = vpop.f32.mrf.mxu2  ;;  %v1891_v57 = vadd.f32 %v1875_v30, %v3589_v35  ;;  %2352 = vrcp.f32 %v3996_v47  ;;  %v1209_v24 = vadd.f32 %v3943_v58, %v3592_v4  ;;  %vm1756_vm7 = vcmp.eq.f32.partialorder %v1755_v22, 8.507059e+37 }
 0x365   :  { %v1985_v15 = vmax.f32 %v1969_v6, 0.0  ;;  %v1754_v53 = vsel %vm1753_vm6, %v2337_v2, %v1750_v40  ;;  %v1150_v23 = vadd.f32 %v1149_v21, %v3460_v60  ;;  %2354 = vrcp.f32 %v3965_v19 }
 0x366   :  { %v2347_v59 = vpop.eup %2346  ;;  %v4012_v0 = vadd.f32 %v4285_v31, %v3235_v3  ;;  %v1759_v49 = vsel %vm1756_vm7, %v1758_v48, %v1754_v53  ;;  %v4014_v61 = vor.u32 1.1754944e-38, %v1512_v7  ;;  %v4020_v58 = vsel %vm3982_vm3, %v3861_v11, %v1494_v28  ;;  %v1214_v28 = vpop.f32.mrf.mxu3 }
 0x367   :  { %2001 = vst [vmem:[#allocation14 + $0x38] sm:$0xff] %v1985_v15  ;;  %v1922_v35 = vsub.f32 1.0, %v1759_v49  ;;  %v1762_v20 = vmul.f32 %v2347_v59, %v3969_v44  ;;  %v1525_v2 = vand.u32 2147483647, %v3965_v19  ;;  %2356 = vrcp.f32 %v3994_v13 }
 0x368   :  { %v2349_v46 = vpop.eup %2348  ;;  %v1876_v3 = vmul.f32 %v3840_v25, %v1209_v24  ;;  %v1558_v34 = vadd.f32 %v1150_v23, %v3676_v39  ;;  %v1503_v7 = vsub.f32 1.0, %v4000_v45  ;;  %v1954_v54 = vmul.f32 %v2398_v29, %v1759_v49 }
 0x369   :  { %v2351_v12 = vpop.eup %2350  ;;  %v1938_v63 = vmul.f32 %v2349_v46, %v1922_v35  ;;  %v1763_v26 = vsub.f32 1.0, %v1762_v20  ;;  %2358 = vtanh.f32 %v1891_v57  ;;  %v1772_v11 = vand.u32 2147483648, %v3969_v44  ;;  %v2399_v35 = vld [vmem:[#allocation7 + $0x48] sm:$0xff] }
 0x36a   :  { %v2353_v36 = vpop.eup %2352  ;;  %v1770_v32 = vand.u32 2147483647, %v3969_v44  ;;  %v4029_v8 = vadd.f32 1.0, %v2351_v12  ;;  %v2076_v17 = vmul.f32 -1.442695, %v1558_v34  ;;  %vm1767_vm8 = vweird.f32 %v2347_v59 }
 0x36b   :  { %v1970_v30 = vadd.f32 %v1954_v54, %v1938_v63  ;;  %v1764_v25 = vmul.f32 %v2347_v59, %v1763_v26  ;;  %v1777_v39 = vmul.f32 %v2353_v36, %v3996_v47  ;;  %v4032_v62 = vpop.eup %2354  ;;  %vm1766_vm9 = vweird.f32 %v3969_v44 }
 0x36c   :  { %v1152_v38 = vpop.f32.mrf.mxu2  ;;  %v1892_v22 = vadd.f32 %v1876_v3, %v3601_v52  ;;  %2360 = vrcp.f32 %v4029_v8  ;;  %v1212_v10 = vadd.f32 %v1211_v56, %v3592_v4  ;;  %vm1768_vm10 = vmor %vm1766_vm9, %vm1767_vm8  ;;  %v1773_v41 = vor.u32 1.1754944e-38, %v1772_v11 }
 0x36d   :  { %v1986_v27 = vmax.f32 %v1970_v30, 0.0  ;;  %v1765_v33 = vadd.f32 %v2347_v59, %v1764_v25  ;;  %v1778_v5 = vsub.f32 1.0, %v1777_v39  ;;  %2362 = vpow2.f32 %v2076_v17  ;;  %v4038_v14 = vpop.eup %2356 }
 0x36e   :  { %v1787_v45 = vand.u32 2147483648, %v3996_v47  ;;  %v1785_v6 = vand.u32 2147483647, %v3996_v47  ;;  %v1153_v44 = vadd.f32 %v1152_v38, %v3460_v60  ;;  %vm1771_vm11 = vcmp.eq.f32.partialorder %v1770_v32, 8.507059e+37  ;;  %v1217_v11 = vpop.f32.mrf.mxu3 }
 0x36f   :  { %v2359_v40 = vpop.eup %2358  ;;  %2002 = vst [vmem:[#allocation14 + $0x40] sm:$0xff] %v1986_v27  ;;  %v1769_v52 = vsel %vm1768_vm10, %v2347_v59, %v1765_v33  ;;  %v1779_v21 = vmul.f32 %v2353_v36, %v1778_v5  ;;  %vm1782_vm12 = vweird.f32 %v2353_v36  ;;  %2364 = vtanh.f32 %v1892_v22 }
 0x370   :  { %v1774_v56 = vsel %vm1771_vm11, %v1773_v41, %v1769_v52  ;;  %v1877_v48 = vmul.f32 %v3950_v1, %v1212_v10  ;;  %v1559_v57 = vadd.f32 %v1153_v44, %v3775_v18  ;;  %vm1507_vm13 = vweird.f32 %v3957_v55 }
 0x371   :  { %v1923_v24 = vsub.f32 1.0, %v1774_v56  ;;  %vm1781_vm14 = vweird.f32 %v3996_v47  ;;  %v1780_v15 = vadd.f32 %v2353_v36, %v1779_v21  ;;  %v1504_v53 = vmul.f32 %v3957_v55, %v1503_v7 }
 0x372   :  { %v2361_v23 = vpop.eup %2360  ;;  %vm1783_vm15 = vmor %vm1781_vm14, %vm1782_vm12  ;;  %v1788_v59 = vor.u32 1.1754944e-38, %v1787_v45  ;;  %vm1786_vm0 = vcmp.eq.f32.partialorder %v1785_v6, 8.507059e+37  ;;  %v2077_v31 = vmul.f32 -1.442695, %v1559_v57  ;;  %vm1506_vm1 = vweird.f32 %v3911_v37 }
 0x373   :  { %v1517_v1 = vmul.f32 %v4032_v62, %v3965_v19  ;;  %v2363_v49 = vpop.eup %2362  ;;  %v1939_v18 = vmul.f32 %v2359_v40, %v1923_v24  ;;  %v1955_v20 = vmul.f32 %v2399_v35, %v1774_v56  ;;  %v1784_v46 = vsel %vm1783_vm15, %v2353_v36, %v1780_v15  ;;  %vm4080_vm7 = vmor %vm1506_vm1, %vm1507_vm13 }
 0x374   :  { %v1792_v47 = vmul.f32 %v2361_v23, %v4029_v8  ;;  %v1155_v3 = vpop.f32.mrf.mxu2  ;;  %v1789_v34 = vsel %vm1786_vm0, %v1788_v59, %v1784_v46  ;;  %v1893_v7 = vadd.f32 %v1877_v48, %v3634_v9  ;;  %v4053_v12 = vadd.f32 1.0, %v2363_v49  ;;  %v2400_v9 = vld [vmem:[#allocation7 + $0x50] sm:$0xff] }
 0x375   :  { %2366 = vpow2.f32 %v2077_v31  ;;  %v1971_v63 = vadd.f32 %v1955_v20, %v1939_v18  ;;  %v1924_v29 = vsub.f32 1.0, %v1789_v34  ;;  %v1215_v26 = vadd.f32 %v1214_v28, %v3592_v4  ;;  %v2365_v32 = vpop.eup %2364 }
 0x376   :  { %v1793_v54 = vsub.f32 1.0, %v1792_v47  ;;  %vm1797_vm2 = vweird.f32 %v2361_v23  ;;  %v1802_v17 = vand.u32 2147483648, %v4029_v8  ;;  %v1800_v36 = vand.u32 2147483647, %v4029_v8 }
 0x377   :  { %2368 = vrcp.f32 %v4053_v12  ;;  %v1987_v30 = vmax.f32 %v1971_v63, 0.0  ;;  %v1940_v25 = vmul.f32 %v2365_v32, %v1924_v29  ;;  %v1956_v39 = vmul.f32 %v2400_v9, %v1789_v34 }
 0x378   :  { %v1794_v38 = vmul.f32 %v2361_v23, %v1793_v54  ;;  %vm4061_vm3 = vcmp.eq.f32.partialorder %v1510_v42, 8.507059e+37  ;;  %2370 = vtanh.f32 %v1893_v7  ;;  %v1505_v28 = vadd.f32 %v3957_v55, %v1504_v53 }
 0x379   :  { %v1156_v10 = vadd.f32 %v1155_v3, %v3460_v60  ;;  %v1518_v27 = vsub.f32 1.0, %v1517_v1  ;;  %2003 = vst [vmem:[#allocation14 + $0x48] sm:$0xff] %v1987_v30  ;;  %v1972_v33 = vadd.f32 %v1956_v39, %v1940_v25  ;;  %vm1796_vm4 = vweird.f32 %v4029_v8  ;;  %v2401_v1 = vld [vmem:[#allocation7 + $0x58] sm:$0xff]  ;;  %v969_v25 = vpop.f32.mrf.mxu0 }
 0x37a   :  { %v1795_v5 = vadd.f32 %v2361_v23, %v1794_v38  ;;  %v1532_v41 = vmul.f32 %v4038_v14, %v3994_v13  ;;  %vm1798_vm5 = vmor %vm1796_vm4, %vm1797_vm2  ;;  %v1803_v42 = vor.u32 1.1754944e-38, %v1802_v17  ;;  %v1878_v6 = vmul.f32 %v4020_v58, %v1215_v26 }
 0x37b   :  { %v2367_v45 = vpop.eup %2366  ;;  %v1560_v44 = vadd.f32 %v1156_v10, %v3853_v50  ;;  %v1527_v40 = vand.u32 2147483648, %v3965_v19  ;;  %v1988_v52 = vmax.f32 %v1972_v33, 0.0  ;;  %vm1801_vm6 = vcmp.eq.f32.partialorder %v1800_v36, 8.507059e+37 }
 0x37c   :  { %v1799_v21 = vsel %vm1798_vm5, %v2361_v23, %v1795_v5  ;;  %v4074_v56 = vadd.f32 1.0, %v2367_v45  ;;  %v1158_v48 = vpop.f32.mrf.mxu2  ;;  %v1509_v50 = vsel %vm4080_vm7, %v3957_v55, %v1505_v28  ;;  %vm1521_vm8 = vweird.f32 %v3965_v19 }
 0x37d   :  { %v2369_v57 = vpop.eup %2368  ;;  %v1804_v58 = vsel %vm1801_vm6, %v1803_v42, %v1799_v21  ;;  %v2078_v24 = vmul.f32 -1.442695, %v1560_v44  ;;  %v1159_v15 = vadd.f32 %v1158_v48, %v3460_v60  ;;  %2004 = vst [vmem:[#allocation14 + $0x50] sm:$0xff] %v1988_v52  ;;  %v1519_v23 = vmul.f32 %v4032_v62, %v1518_v27  ;;  %v1220_v60 = vpop.f32.mrf.mxu3  ;;  %v2402_v44 = vld [vmem:[#allocation7 + $0x60] sm:$0xff] }
 0x37e   :  { %v1925_v53 = vsub.f32 1.0, %v1804_v58  ;;  %v1807_v37 = vmul.f32 %v2369_v57, %v4053_v12  ;;  %v1533_v59 = vsub.f32 1.0, %v1532_v41  ;;  %v2371_v31 = vpop.eup %2370  ;;  %v1957_v49 = vmul.f32 %v2401_v1, %v1804_v58 }
 0x37f   :  { %v1894_v18 = vadd.f32 %v1878_v6, %v3664_v16  ;;  %2372 = vrcp.f32 %v4074_v56  ;;  %v1218_v55 = vadd.f32 %v1217_v11, %v3592_v4  ;;  %v1561_v46 = vadd.f32 %v1159_v15, %v4012_v0 }
 0x380   :  { %v1941_v35 = vmul.f32 %v2371_v31, %v1925_v53  ;;  %v1808_v20 = vsub.f32 1.0, %v1807_v37  ;;  %2374 = vpow2.f32 %v2078_v24  ;;  %v1817_v47 = vand.u32 2147483648, %v4053_v12 }
 0x381   :  { %v1815_v3 = vand.u32 2147483647, %v4053_v12  ;;  %v1514_v34 = vsel %vm4061_vm3, %v4014_v61, %v1509_v50  ;;  %vm1522_vm9 = vweird.f32 %v4032_v62  ;;  %vm1812_vm10 = vweird.f32 %v2369_v57 }
 0x382   :  { %v1973_v16 = vadd.f32 %v1957_v49, %v1941_v35  ;;  %v1809_v7 = vmul.f32 %v2369_v57, %v1808_v20  ;;  %v2079_v63 = vmul.f32 -1.442695, %v1561_v46  ;;  %2376 = vtanh.f32 %v1894_v18  ;;  %vm4116_vm0 = vmor %vm1521_vm8, %vm1522_vm9  ;;  %v972_v49 = vpop.f32.mrf.mxu0 }
 0x383   :  { %v1879_v29 = vmul.f32 %v1514_v34, %v1218_v55  ;;  %v1520_v54 = vadd.f32 %v4032_v62, %v1519_v23  ;;  %v1534_v0 = vmul.f32 %v4038_v14, %v1533_v59  ;;  %vm1811_vm11 = vweird.f32 %v4053_v12 }
 0x384   :  { %v1989_v26 = vmax.f32 %v1973_v16, 0.0  ;;  %v1810_v11 = vadd.f32 %v2369_v57, %v1809_v7  ;;  %2378 = vpow2.f32 %v2079_v63  ;;  %vm1813_vm12 = vmor %vm1811_vm11, %vm1812_vm10  ;;  %v1818_v61 = vor.u32 1.1754944e-38, %v1817_v47 }
 0x385   :  { %v2373_v32 = vpop.eup %2372  ;;  %vm4106_vm13 = vcmp.eq.f32.partialorder %v1525_v2, 8.507059e+37  ;;  %v1528_v36 = vor.u32 1.1754944e-38, %v1527_v40  ;;  %vm1536_vm14 = vweird.f32 %v3994_v13  ;;  %vm1816_vm15 = vcmp.eq.f32.partialorder %v1815_v3, 8.507059e+37  ;;  %v1223_v52 = vpop.f32.mrf.mxu3 }
 0x386   :  { %v2375_v30 = vpop.eup %2374  ;;  %2005 = vst [vmem:[#allocation14 + $0x58] sm:$0xff] %v1989_v26  ;;  %v1814_v9 = vsel %vm1813_vm12, %v2369_v57, %v1810_v11  ;;  %v1822_v12 = vmul.f32 %v2373_v32, %v4074_v56  ;;  %v1542_v2 = vand.u32 2147483648, %v3994_v13  ;;  %v1895_v22 = vadd.f32 %v1879_v29, %v3694_v43 }
 0x387   :  { %v1819_v38 = vsel %vm1816_vm15, %v1818_v61, %v1814_v9  ;;  %v4122_v28 = vadd.f32 1.0, %v2375_v30  ;;  %v1524_v10 = vsel %vm4116_vm0, %v4032_v62, %v1520_v54  ;;  %v1535_v5 = vadd.f32 %v4038_v14, %v1534_v0 }
 0x388   :  { %v1926_v27 = vsub.f32 1.0, %v1819_v38  ;;  %v1823_v33 = vsub.f32 1.0, %v1822_v12  ;;  %vm1537_vm1 = vweird.f32 %v4038_v14  ;;  %v2377_v19 = vpop.eup %2376  ;;  %v1832_v41 = vand.u32 2147483648, %v4074_v56 }
 0x389   :  { %v1830_v45 = vand.u32 2147483647, %v4074_v56  ;;  %2380 = vrcp.f32 %v4122_v28  ;;  %v1221_v43 = vadd.f32 %v1220_v60, %v3592_v4  ;;  %v1958_v40 = vmul.f32 %v2402_v44, %v1819_v38  ;;  %vm4141_vm3 = vmor %vm1536_vm14, %vm1537_vm1 }
 0x38a   :  { %v2379_v42 = vpop.eup %2378  ;;  %v1942_v6 = vmul.f32 %v2377_v19, %v1926_v27  ;;  %v1824_v62 = vmul.f32 %v2373_v32, %v1823_v33  ;;  %vm1827_vm2 = vweird.f32 %v2373_v32  ;;  %2382 = vtanh.f32 %v1895_v22 }
 0x38b   :  { %v1529_v21 = vsel %vm4106_vm13, %v1528_v36, %v1524_v10  ;;  %v4135_v8 = vadd.f32 1.0, %v2379_v42  ;;  %v1540_v57 = vand.u32 2147483647, %v3994_v13  ;;  %vm1826_vm4 = vweird.f32 %v4074_v56  ;;  %v2405_v42 = vld [vmem:[#allocation7 + $0x78] sm:$0xff] }
 0x38c   :  { %v1974_v58 = vadd.f32 %v1958_v40, %v1942_v6  ;;  %v1825_v50 = vadd.f32 %v2373_v32, %v1824_v62  ;;  %v1539_v24 = vsel %vm4141_vm3, %v4038_v14, %v1535_v5  ;;  %vm1828_vm5 = vmor %vm1826_vm4, %vm1827_vm2  ;;  %v1833_v15 = vor.u32 1.1754944e-38, %v1832_v41 }
 0x38d   :  { %v1880_v53 = vmul.f32 %v1529_v21, %v1221_v43  ;;  %2384 = vrcp.f32 %v4135_v8  ;;  %v1224_v37 = vadd.f32 %v1223_v52, %v3592_v4  ;;  %vm1831_vm6 = vcmp.eq.f32.partialorder %v1830_v45, 8.507059e+37  ;;  %v2403_v4 = vld [vmem:[#allocation7 + $0x68] sm:$0xff] }
 0x38e   :  { %v1990_v23 = vmax.f32 %v1974_v58, 0.0  ;;  %v1829_v59 = vsel %vm1828_vm5, %v2373_v32, %v1825_v50  ;;  %v1543_v31 = vor.u32 1.1754944e-38, %v1542_v2  ;;  %v970_v1 = vadd.f32 %v969_v25, %v3231_v51 }
 0x38f   :  { %v2381_v13 = vpop.eup %2380  ;;  %v1834_v56 = vsel %vm1831_vm6, %v1833_v15, %v1829_v59  ;;  %vm1541_vm7 = vcmp.eq.f32.partialorder %v1540_v57, 8.507059e+37  ;;  %v973_v16 = vadd.f32 %v972_v49, %v3231_v51  ;;  %v1847_v7 = vand.u32 2147483648, %v4122_v28 }
 0x390   :  { %2006 = vst [vmem:[#allocation14 + $0x60] sm:$0xff] %v1990_v23  ;;  %v1927_v18 = vsub.f32 1.0, %v1834_v56  ;;  %v1837_v14 = vmul.f32 %v2381_v13, %v4122_v28  ;;  %v1544_v55 = vsel %vm1541_vm7, %v1543_v31, %v1539_v24  ;;  %v2383_v35 = vpop.eup %2382  ;;  %v1896_v20 = vadd.f32 %v1880_v53, %v970_v1 }
 0x391   :  { %v1881_v60 = vmul.f32 %v1544_v55, %v1224_v37  ;;  %v1959_v47 = vmul.f32 %v2403_v4, %v1834_v56  ;;  %v1845_v63 = vand.u32 2147483647, %v4122_v28  ;;  %vm1842_vm8 = vweird.f32 %v2381_v13 }
 0x392   :  { %v1943_v46 = vmul.f32 %v2383_v35, %v1927_v18  ;;  %v1838_v3 = vsub.f32 1.0, %v1837_v14  ;;  %2386 = vtanh.f32 %v1896_v20  ;;  %vm1841_vm9 = vweird.f32 %v4122_v28  ;;  %v2404_v28 = vld [vmem:[#allocation7 + $0x70] sm:$0xff] }
 0x393   :  { %v2385_v34 = vpop.eup %2384  ;;  %v1897_v26 = vadd.f32 %v1881_v60, %v973_v16  ;;  %vm1843_vm10 = vmor %vm1841_vm9, %vm1842_vm8  ;;  %v1848_v17 = vor.u32 1.1754944e-38, %v1847_v7  ;;  %vm1846_vm11 = vcmp.eq.f32.partialorder %v1845_v63, 8.507059e+37  ;;  %v1862_v51 = vand.u32 2147483648, %v4135_v8 }
 0x394   :  { %v1975_v29 = vadd.f32 %v1959_v47, %v1943_v46  ;;  %v1839_v54 = vmul.f32 %v2381_v13, %v1838_v3  ;;  %v1852_v0 = vmul.f32 %v2385_v34, %v4135_v8  ;;  %vm1857_vm12 = vweird.f32 %v2385_v34 }
 0x395   :  { %v1860_v25 = vand.u32 2147483647, %v4135_v8  ;;  %2388 = vtanh.f32 %v1897_v26  ;;  %vm1856_vm13 = vweird.f32 %v4135_v8  ;;  %v1863_v38 = vor.u32 1.1754944e-38, %v1862_v51 }
 0x396   :  { %v1991_v11 = vmax.f32 %v1975_v29, 0.0  ;;  %v1840_v32 = vadd.f32 %v2381_v13, %v1839_v54  ;;  %v1853_v61 = vsub.f32 1.0, %v1852_v0  ;;  %vm1858_vm14 = vmor %vm1856_vm13, %vm1857_vm12 }
 0x397   :  { %vm1861_vm15 = vcmp.eq.f32.partialorder %v1860_v25, 8.507059e+37 }
 0x398   :  { %2007 = vst [vmem:[#allocation14 + $0x68] sm:$0xff] %v1991_v11  ;;  %v1844_v36 = vsel %vm1843_vm10, %v2381_v13, %v1840_v32  ;;  %v1854_v30 = vmul.f32 %v2385_v34, %v1853_v61  ;;  %v2387_v2 = vpop.eup %2386 }
 0x399   :  { %v1849_v9 = vsel %vm1846_vm11, %v1848_v17, %v1844_v36 }
 0x39a   :  { %v1928_v12 = vsub.f32 1.0, %v1849_v9  ;;  %v1855_v39 = vadd.f32 %v2385_v34, %v1854_v30  ;;  %v1960_v10 = vmul.f32 %v2404_v28, %v1849_v9 }
 0x39b   :  { %v2389_v41 = vpop.eup %2388 }
 0x39c   :  { %v1944_v22 = vmul.f32 %v2387_v2, %v1928_v12  ;;  %v1859_v27 = vsel %vm1858_vm14, %v2385_v34, %v1855_v39 }
 0x39d   :  { %v1864_v33 = vsel %vm1861_vm15, %v1863_v38, %v1859_v27 }
 0x39e   :  { %v1976_v5 = vadd.f32 %v1960_v10, %v1944_v22  ;;  %v1929_v19 = vsub.f32 1.0, %v1864_v33  ;;  %v1961_v6 = vmul.f32 %v2405_v42, %v1864_v33 }
 0x3a0   :  { %v1992_v45 = vmax.f32 %v1976_v5, 0.0  ;;  %v1945_v43 = vmul.f32 %v2389_v41, %v1929_v19 }
 0x3a2   :  { %2008 = vst [vmem:[#allocation14 + $0x70] sm:$0xff] %v1992_v45  ;;  %v1977_v44 = vadd.f32 %v1961_v6, %v1945_v43 }
 0x3a4   :  { %v1993_v40 = vmax.f32 %v1977_v44, 0.0 }
 0x3a6   :  { %2009 = vst [vmem:[#allocation14 + $0x78] sm:$0xff] %v1993_v40 }
 0x3a7   :  { %2022 = dma.vmem_to_hbm [thread:$0]  %s2015_s8, 2048, %s2017_s28, [#allocation4], %s2612_s1, %s2612_s1, %s2613_s24  }
 0x3a8   :  { %2606 = dma.done.wait [#allocation4], 2048  }
 0x3a9   :  { %2607 = vsyncadd [#allocation4], 4294965248 }
 0x3aa   :  { %2027 = vsyncpa [#allocation3], 1 }
 0x3ab   :  { %2028 = vsyncpa [#allocation6], 1 }
 0x3ac   :  { %2029 = vsyncpa [#allocation9], 1 }
 0x3ad   :  { %2030 = vsyncpa [#allocation12], 1 }
 0x3ae   :  { %2031 = vsyncpa [#allocation4], 1 }

</bundles_post_ra>
